<compile_context>
chip_gen: v7x
topology: tpu7x:2x2x1
jax: 0.10.0
libtpu: 0.0.40
codegen_flags: <defaults>
</compile_context>

<pallas_src>
import jax
import jax.numpy as jnp
from jax.experimental import pallas as pl
from jax.experimental.pallas import tpu as pltpu  # noqa: F401  (TPU backend)


def lstmal_kernel(xx_ref, y_ref, wx_ref, wh_ref, bx_ref,
                  gw_ref, gb_ref, hw_ref, hb_ref, bw_ref, bb_ref,
                  loss_ref, encx_ref, h_ref, c_ref, ency_ref):
    B, T, twoH = encx_ref.shape
    H = twoH // 2
    f32 = jnp.float32

    # ---- hoisted input projection: one lane-dense matmul for all steps &
    #      both directions, biases folded in ------------------------------
    # xx_ref: (T*B, 2I), rows time-major; columns = [x_t | x_{T-1-t}].
    # wx_ref: (2I, 8H) block-diag(Wih_f^T, Wih_r^T), gate-major/dir-minor.
    gx = (jnp.dot(xx_ref[...], wx_ref[...], preferred_element_type=f32)
          + bx_ref[...])                                        # (T*B, 8H)

    wh = wh_ref[...]                                            # (2H, 8H)

    h = jnp.zeros((B, 2 * H), f32)     # [h_fwd | h_rev]
    c = jnp.zeros((B, 2 * H), f32)     # [c_fwd | c_rev]
    hs = []
    for s in range(T):                 # fully unrolled recurrence (T static)
        gates = (gx[s * B:(s + 1) * B, :]
                 + jnp.dot(h, wh, preferred_element_type=f32))  # (B, 8H)
        sig = jax.nn.sigmoid(gates)    # activate the whole vector once
        th = jnp.tanh(gates)
        i_a = sig[:, 0 * H:2 * H]
        f_a = sig[:, 2 * H:4 * H]
        g_a = th[:, 4 * H:6 * H]
        o_a = sig[:, 6 * H:8 * H]
        c = f_a * c + i_a * g_a
        h = o_a * jnp.tanh(c)
        hs.append(h)                   # slot s holds [h_f(t=s) | h_r(t=T-1-s)]

    # final hidden / cell states: (2, B, H) = (fwd, rev), like PyTorch
    h_ref[0, :, :] = h[:, 0:H]
    h_ref[1, :, :] = h[:, H:2 * H]
    c_ref[0, :, :] = c[:, 0:H]
    c_ref[1, :, :] = c[:, H:2 * H]

    # enc_x assembled from the collected per-step states, single store.
    rows = [jnp.concatenate([hs[t][:, 0:H], hs[T - 1 - t][:, H:2 * H]],
                            axis=-1)                              # (B, 2H)
            for t in range(T)]
    encx_ref[...] = jnp.stack(rows, axis=1)                       # (B, T, 2H)

    # ---- heads + losses (dropout = identity, eval mode) -----------------
    y = y_ref[...]                                                # (B, L)
    enc_y = jnp.tanh(jnp.dot(y, gw_ref[...],
                             preferred_element_type=f32) + gb_ref[...])
    ae_y = jnp.tanh(jnp.dot(enc_y, hw_ref[...],
                            preferred_element_type=f32) + hb_ref[...])
    h_sum = h[:, 0:H] + h[:, H:2 * H]                             # h_f + h_r
    b_x = jnp.tanh(jnp.dot(h_sum, bw_ref[...],
                           preferred_element_type=f32) + bb_ref[...])

    ency_ref[...] = enc_y
    loss = jnp.mean((ae_y - y) ** 2) + jnp.mean((b_x - enc_y) ** 2)
    loss_ref[...] = loss.reshape(1, 1)


def init_params(key, inp_dim, hid_dim, lab_dim):
    ks = jax.random.split(key, 20)
    kh = 1.0 / jnp.sqrt(jnp.float32(hid_dim))
    kl = 1.0 / jnp.sqrt(jnp.float32(lab_dim))

    def u(k, shape, s):
        return jax.random.uniform(k, shape, jnp.float32, -s, s)

    p = {
        # LSTM forward direction (PyTorch layout: (4H, in)/(4H, H), gates i,f,g,o)
        "wih_f": u(ks[0], (4 * hid_dim, inp_dim), kh),
        "whh_f": u(ks[1], (4 * hid_dim, hid_dim), kh),
        "bih_f": u(ks[2], (4 * hid_dim,), kh),
        "bhh_f": u(ks[3], (4 * hid_dim,), kh),
        # LSTM reverse direction
        "wih_r": u(ks[4], (4 * hid_dim, inp_dim), kh),
        "whh_r": u(ks[5], (4 * hid_dim, hid_dim), kh),
        "bih_r": u(ks[6], (4 * hid_dim,), kh),
        "bhh_r": u(ks[7], (4 * hid_dim,), kh),
        # g: Linear(lab, lab)
        "gw": u(ks[8], (lab_dim, lab_dim), kl),
        "gb": u(ks[9], (lab_dim,), kl),
        # h: Linear(lab, lab)
        "hw": u(ks[10], (lab_dim, lab_dim), kl),
        "hb": u(ks[11], (lab_dim,), kl),
        # b: Linear(hid, lab)
        "bw": u(ks[12], (lab_dim, hid_dim), kh),
        "bb": u(ks[13], (lab_dim,), kh),
    }
    return p


def _interleave_gates(wf, wr, H):
    """Interleave [i,f,g,o] column blocks of two directions into gate-major,
    direction-minor order: [i_f,i_r,f_f,f_r,g_f,g_r,o_f,o_r]."""
    rows = wf.shape[0]
    w = jnp.stack([wf.reshape(rows, 4, H), wr.reshape(rows, 4, H)], axis=2)
    return w.reshape(rows, 8 * H)


def lstmal_forward(x, y, params, hid_dim, lab_dim):
    B, T, I = x.shape
    H, L = hid_dim, lab_dim
    f32 = jnp.float32

    x = x.astype(f32)
    y = y.astype(f32)

    # Block-diagonal (over direction), pre-transposed, gate-interleaved weights.
    wih_f_t = params["wih_f"].astype(f32).T        # (I, 4H)
    wih_r_t = params["wih_r"].astype(f32).T
    whh_f_t = params["whh_f"].astype(f32).T        # (H, 4H)
    whh_r_t = params["whh_r"].astype(f32).T
    zI = jnp.zeros((I, 4 * H), f32)
    zH = jnp.zeros((H, 4 * H), f32)
    wx = jnp.concatenate([_interleave_gates(wih_f_t, zI, H),
                          _interleave_gates(zI, wih_r_t, H)], axis=0)   # (2I, 8H)
    wh = jnp.concatenate([_interleave_gates(whh_f_t, zH, H),
                          _interleave_gates(zH, whh_r_t, H)], axis=0)   # (2H, 8H)
    bf = (params["bih_f"] + params["bhh_f"]).astype(f32).reshape(1, 4 * H)
    br = (params["bih_r"] + params["bhh_r"]).astype(f32).reshape(1, 4 * H)
    bx = _interleave_gates(bf, br, H)                                   # (1, 8H)

    # Per-step inputs for both directions, time-major:
    # row (t*B + b) = [x[b, t, :] | x[b, T-1-t, :]].
    x_tb = jnp.transpose(x, (1, 0, 2))                    # (T, B, I)
    xx = jnp.concatenate([x_tb, x_tb[::-1]], axis=-1)     # (T, B, 2I)
    xx = xx.reshape(T * B, 2 * I)

    args = (
        xx, y,
        wx, wh, bx,
        params["gw"].astype(f32).T, params["gb"].astype(f32).reshape(1, -1),
        params["hw"].astype(f32).T, params["hb"].astype(f32).reshape(1, -1),
        params["bw"].astype(f32).T, params["bb"].astype(f32).reshape(1, -1),
    )

    out_shape = (
        jax.ShapeDtypeStruct((1, 1), f32),                # loss
        jax.ShapeDtypeStruct((B, T, 2 * H), f32),         # enc_x
        jax.ShapeDtypeStruct((2, B, H), f32),             # h
        jax.ShapeDtypeStruct((2, B, H), f32),             # c
        jax.ShapeDtypeStruct((B, L), f32),                # enc_y
    )

    loss, enc_x, h, c, enc_y = pl.pallas_call(
        lstmal_kernel,
        out_shape=out_shape,
    )(*args)

    return loss[0, 0], enc_x, (h, c), enc_y


if __name__ == "__main__":
    inp_dim, hid_dim, lab_dim = 16, 32, 32
    B, T = 2, 8

    key = jax.random.PRNGKey(0)
    kx, ky, kp = jax.random.split(key, 3)
    x = jax.random.normal(kx, (B, T, inp_dim), jnp.float32)
    y = jax.random.normal(ky, (B, lab_dim), jnp.float32)
    params = init_params(kp, inp_dim, hid_dim, lab_dim)

    loss, enc_x, (h, c), enc_y = lstmal_forward(x, y, params, hid_dim, lab_dim)
    jax.block_until_ready((loss, enc_x, h, c, enc_y))

    assert enc_x.shape == (B, T, 2 * hid_dim)
    assert h.shape == (2, B, hid_dim) and c.shape == (2, B, hid_dim)
    assert enc_y.shape == (B, lab_dim)
    assert bool(jnp.isfinite(loss))
    print("KERNEL_OK")
</pallas_src>

<mosaic_0001>
module attributes {stable_mosaic.version = 11 : i64} {
  func.func @lstmal_kernel(%arg0: memref<16x32xf32, #tpu.memory_space<vmem>>, %arg1: memref<2x32xf32, #tpu.memory_space<vmem>>, %arg2: memref<32x256xf32, #tpu.memory_space<vmem>>, %arg3: memref<64x256xf32, #tpu.memory_space<vmem>>, %arg4: memref<1x256xf32, #tpu.memory_space<vmem>>, %arg5: memref<32x32xf32, #tpu.memory_space<vmem>>, %arg6: memref<1x32xf32, #tpu.memory_space<vmem>>, %arg7: memref<32x32xf32, #tpu.memory_space<vmem>>, %arg8: memref<1x32xf32, #tpu.memory_space<vmem>>, %arg9: memref<32x32xf32, #tpu.memory_space<vmem>>, %arg10: memref<1x32xf32, #tpu.memory_space<vmem>>, %arg11: memref<1x1xf32, #tpu.memory_space<vmem>>, %arg12: memref<2x8x64xf32, #tpu.memory_space<vmem>>, %arg13: memref<2x2x32xf32, #tpu.memory_space<vmem>>, %arg14: memref<2x2x32xf32, #tpu.memory_space<vmem>>, %arg15: memref<2x32xf32, #tpu.memory_space<vmem>>) attributes {dimension_semantics = [], scalar_prefetch = 0 : i64, scratch_operands = 0 : i64, tpu.core_type = #tpu.core_type<tc>} {
    %c0 = arith.constant 0 : index
    %c0_0 = arith.constant 0 : index
    %0 = vector.load %arg0[%c0, %c0_0] : memref<16x32xf32, #tpu.memory_space<vmem>>, vector<16x32xf32>
    %c0_1 = arith.constant 0 : index
    %c0_2 = arith.constant 0 : index
    %1 = vector.load %arg2[%c0_1, %c0_2] : memref<32x256xf32, #tpu.memory_space<vmem>>, vector<32x256xf32>
    %cst = arith.constant dense<0.000000e+00> : vector<16x256xf32>
    %2 = tpu.matmul %0, %1, %cst {dimension_numbers = #tpu.dot_dimension_numbers<[1], [0], [0], [1], [0, 0, 1, 1], [], []>} : vector<16x32xf32>, vector<32x256xf32>, vector<16x256xf32> -> vector<16x256xf32>
    %c0_3 = arith.constant 0 : index
    %c0_4 = arith.constant 0 : index
    %3 = vector.load %arg4[%c0_3, %c0_4] : memref<1x256xf32, #tpu.memory_space<vmem>>, vector<1x256xf32>
    %4 = vector.broadcast %3 : vector<1x256xf32> to vector<16x256xf32>
    %5 = arith.addf %2, %4 : vector<16x256xf32>
    %c0_5 = arith.constant 0 : index
    %c0_6 = arith.constant 0 : index
    %6 = vector.load %arg3[%c0_5, %c0_6] : memref<64x256xf32, #tpu.memory_space<vmem>>, vector<64x256xf32>
    %cst_7 = arith.constant 0.000000e+00 : f32
    %7 = vector.broadcast %cst_7 : f32 to vector<2x64xf32>
    %cst_8 = arith.constant 0.000000e+00 : f32
    %8 = vector.broadcast %cst_8 : f32 to vector<2x64xf32>
    %9 = vector.extract_strided_slice %5 {offsets = [0, 0], sizes = [2, 256], strides = [1, 1]} : vector<16x256xf32> to vector<2x256xf32>
    %cst_9 = arith.constant dense<0.000000e+00> : vector<2x256xf32>
    %10 = tpu.matmul %7, %6, %cst_9 {dimension_numbers = #tpu.dot_dimension_numbers<[1], [0], [0], [1], [0, 0, 1, 1], [], []>} : vector<2x64xf32>, vector<64x256xf32>, vector<2x256xf32> -> vector<2x256xf32>
    %11 = arith.addf %9, %10 : vector<2x256xf32>
    %12 = arith.negf %11 : vector<2x256xf32>
    %13 = math.exp %12 : vector<2x256xf32>
    %cst_10 = arith.constant 1.000000e+00 : f32
    %14 = vector.broadcast %cst_10 : f32 to vector<2x256xf32>
    %15 = arith.addf %14, %13 : vector<2x256xf32>
    %16 = arith.divf %14, %15 : vector<2x256xf32>
    %17 = math.tanh %11 : vector<2x256xf32>
    %18 = vector.extract_strided_slice %16 {offsets = [0, 0], sizes = [2, 64], strides = [1, 1]} : vector<2x256xf32> to vector<2x64xf32>
    %19 = vector.extract_strided_slice %16 {offsets = [0, 64], sizes = [2, 64], strides = [1, 1]} : vector<2x256xf32> to vector<2x64xf32>
    %20 = vector.extract_strided_slice %17 {offsets = [0, 128], sizes = [2, 64], strides = [1, 1]} : vector<2x256xf32> to vector<2x64xf32>
    %21 = vector.extract_strided_slice %16 {offsets = [0, 192], sizes = [2, 64], strides = [1, 1]} : vector<2x256xf32> to vector<2x64xf32>
    %22 = arith.mulf %19, %8 : vector<2x64xf32>
    %23 = arith.mulf %18, %20 : vector<2x64xf32>
    %24 = arith.addf %22, %23 : vector<2x64xf32>
    %25 = math.tanh %24 : vector<2x64xf32>
    %26 = arith.mulf %21, %25 : vector<2x64xf32>
    %27 = vector.extract_strided_slice %5 {offsets = [2, 0], sizes = [2, 256], strides = [1, 1]} : vector<16x256xf32> to vector<2x256xf32>
    %cst_11 = arith.constant dense<0.000000e+00> : vector<2x256xf32>
    %28 = tpu.matmul %26, %6, %cst_11 {dimension_numbers = #tpu.dot_dimension_numbers<[1], [0], [0], [1], [0, 0, 1, 1], [], []>} : vector<2x64xf32>, vector<64x256xf32>, vector<2x256xf32> -> vector<2x256xf32>
    %29 = arith.addf %27, %28 : vector<2x256xf32>
    %30 = arith.negf %29 : vector<2x256xf32>
    %31 = math.exp %30 : vector<2x256xf32>
    %cst_12 = arith.constant 1.000000e+00 : f32
    %32 = vector.broadcast %cst_12 : f32 to vector<2x256xf32>
    %33 = arith.addf %32, %31 : vector<2x256xf32>
    %34 = arith.divf %32, %33 : vector<2x256xf32>
    %35 = math.tanh %29 : vector<2x256xf32>
    %36 = vector.extract_strided_slice %34 {offsets = [0, 0], sizes = [2, 64], strides = [1, 1]} : vector<2x256xf32> to vector<2x64xf32>
    %37 = vector.extract_strided_slice %34 {offsets = [0, 64], sizes = [2, 64], strides = [1, 1]} : vector<2x256xf32> to vector<2x64xf32>
    %38 = vector.extract_strided_slice %35 {offsets = [0, 128], sizes = [2, 64], strides = [1, 1]} : vector<2x256xf32> to vector<2x64xf32>
    %39 = vector.extract_strided_slice %34 {offsets = [0, 192], sizes = [2, 64], strides = [1, 1]} : vector<2x256xf32> to vector<2x64xf32>
    %40 = arith.mulf %37, %24 : vector<2x64xf32>
    %41 = arith.mulf %36, %38 : vector<2x64xf32>
    %42 = arith.addf %40, %41 : vector<2x64xf32>
    %43 = math.tanh %42 : vector<2x64xf32>
    %44 = arith.mulf %39, %43 : vector<2x64xf32>
    %45 = vector.extract_strided_slice %5 {offsets = [4, 0], sizes = [2, 256], strides = [1, 1]} : vector<16x256xf32> to vector<2x256xf32>
    %cst_13 = arith.constant dense<0.000000e+00> : vector<2x256xf32>
    %46 = tpu.matmul %44, %6, %cst_13 {dimension_numbers = #tpu.dot_dimension_numbers<[1], [0], [0], [1], [0, 0, 1, 1], [], []>} : vector<2x64xf32>, vector<64x256xf32>, vector<2x256xf32> -> vector<2x256xf32>
    %47 = arith.addf %45, %46 : vector<2x256xf32>
    %48 = arith.negf %47 : vector<2x256xf32>
    %49 = math.exp %48 : vector<2x256xf32>
    %cst_14 = arith.constant 1.000000e+00 : f32
    %50 = vector.broadcast %cst_14 : f32 to vector<2x256xf32>
    %51 = arith.addf %50, %49 : vector<2x256xf32>
    %52 = arith.divf %50, %51 : vector<2x256xf32>
    %53 = math.tanh %47 : vector<2x256xf32>
    %54 = vector.extract_strided_slice %52 {offsets = [0, 0], sizes = [2, 64], strides = [1, 1]} : vector<2x256xf32> to vector<2x64xf32>
    %55 = vector.extract_strided_slice %52 {offsets = [0, 64], sizes = [2, 64], strides = [1, 1]} : vector<2x256xf32> to vector<2x64xf32>
    %56 = vector.extract_strided_slice %53 {offsets = [0, 128], sizes = [2, 64], strides = [1, 1]} : vector<2x256xf32> to vector<2x64xf32>
    %57 = vector.extract_strided_slice %52 {offsets = [0, 192], sizes = [2, 64], strides = [1, 1]} : vector<2x256xf32> to vector<2x64xf32>
    %58 = arith.mulf %55, %42 : vector<2x64xf32>
    %59 = arith.mulf %54, %56 : vector<2x64xf32>
    %60 = arith.addf %58, %59 : vector<2x64xf32>
    %61 = math.tanh %60 : vector<2x64xf32>
    %62 = arith.mulf %57, %61 : vector<2x64xf32>
    %63 = vector.extract_strided_slice %5 {offsets = [6, 0], sizes = [2, 256], strides = [1, 1]} : vector<16x256xf32> to vector<2x256xf32>
    %cst_15 = arith.constant dense<0.000000e+00> : vector<2x256xf32>
    %64 = tpu.matmul %62, %6, %cst_15 {dimension_numbers = #tpu.dot_dimension_numbers<[1], [0], [0], [1], [0, 0, 1, 1], [], []>} : vector<2x64xf32>, vector<64x256xf32>, vector<2x256xf32> -> vector<2x256xf32>
    %65 = arith.addf %63, %64 : vector<2x256xf32>
    %66 = arith.negf %65 : vector<2x256xf32>
    %67 = math.exp %66 : vector<2x256xf32>
    %cst_16 = arith.constant 1.000000e+00 : f32
    %68 = vector.broadcast %cst_16 : f32 to vector<2x256xf32>
    %69 = arith.addf %68, %67 : vector<2x256xf32>
    %70 = arith.divf %68, %69 : vector<2x256xf32>
    %71 = math.tanh %65 : vector<2x256xf32>
    %72 = vector.extract_strided_slice %70 {offsets = [0, 0], sizes = [2, 64], strides = [1, 1]} : vector<2x256xf32> to vector<2x64xf32>
    %73 = vector.extract_strided_slice %70 {offsets = [0, 64], sizes = [2, 64], strides = [1, 1]} : vector<2x256xf32> to vector<2x64xf32>
    %74 = vector.extract_strided_slice %71 {offsets = [0, 128], sizes = [2, 64], strides = [1, 1]} : vector<2x256xf32> to vector<2x64xf32>
    %75 = vector.extract_strided_slice %70 {offsets = [0, 192], sizes = [2, 64], strides = [1, 1]} : vector<2x256xf32> to vector<2x64xf32>
    %76 = arith.mulf %73, %60 : vector<2x64xf32>
    %77 = arith.mulf %72, %74 : vector<2x64xf32>
    %78 = arith.addf %76, %77 : vector<2x64xf32>
    %79 = math.tanh %78 : vector<2x64xf32>
    %80 = arith.mulf %75, %79 : vector<2x64xf32>
    %81 = vector.extract_strided_slice %5 {offsets = [8, 0], sizes = [2, 256], strides = [1, 1]} : vector<16x256xf32> to vector<2x256xf32>
    %cst_17 = arith.constant dense<0.000000e+00> : vector<2x256xf32>
    %82 = tpu.matmul %80, %6, %cst_17 {dimension_numbers = #tpu.dot_dimension_numbers<[1], [0], [0], [1], [0, 0, 1, 1], [], []>} : vector<2x64xf32>, vector<64x256xf32>, vector<2x256xf32> -> vector<2x256xf32>
    %83 = arith.addf %81, %82 : vector<2x256xf32>
    %84 = arith.negf %83 : vector<2x256xf32>
    %85 = math.exp %84 : vector<2x256xf32>
    %cst_18 = arith.constant 1.000000e+00 : f32
    %86 = vector.broadcast %cst_18 : f32 to vector<2x256xf32>
    %87 = arith.addf %86, %85 : vector<2x256xf32>
    %88 = arith.divf %86, %87 : vector<2x256xf32>
    %89 = math.tanh %83 : vector<2x256xf32>
    %90 = vector.extract_strided_slice %88 {offsets = [0, 0], sizes = [2, 64], strides = [1, 1]} : vector<2x256xf32> to vector<2x64xf32>
    %91 = vector.extract_strided_slice %88 {offsets = [0, 64], sizes = [2, 64], strides = [1, 1]} : vector<2x256xf32> to vector<2x64xf32>
    %92 = vector.extract_strided_slice %89 {offsets = [0, 128], sizes = [2, 64], strides = [1, 1]} : vector<2x256xf32> to vector<2x64xf32>
    %93 = vector.extract_strided_slice %88 {offsets = [0, 192], sizes = [2, 64], strides = [1, 1]} : vector<2x256xf32> to vector<2x64xf32>
    %94 = arith.mulf %91, %78 : vector<2x64xf32>
    %95 = arith.mulf %90, %92 : vector<2x64xf32>
    %96 = arith.addf %94, %95 : vector<2x64xf32>
    %97 = math.tanh %96 : vector<2x64xf32>
    %98 = arith.mulf %93, %97 : vector<2x64xf32>
    %99 = vector.extract_strided_slice %5 {offsets = [10, 0], sizes = [2, 256], strides = [1, 1]} : vector<16x256xf32> to vector<2x256xf32>
    %cst_19 = arith.constant dense<0.000000e+00> : vector<2x256xf32>
    %100 = tpu.matmul %98, %6, %cst_19 {dimension_numbers = #tpu.dot_dimension_numbers<[1], [0], [0], [1], [0, 0, 1, 1], [], []>} : vector<2x64xf32>, vector<64x256xf32>, vector<2x256xf32> -> vector<2x256xf32>
    %101 = arith.addf %99, %100 : vector<2x256xf32>
    %102 = arith.negf %101 : vector<2x256xf32>
    %103 = math.exp %102 : vector<2x256xf32>
    %cst_20 = arith.constant 1.000000e+00 : f32
    %104 = vector.broadcast %cst_20 : f32 to vector<2x256xf32>
    %105 = arith.addf %104, %103 : vector<2x256xf32>
    %106 = arith.divf %104, %105 : vector<2x256xf32>
    %107 = math.tanh %101 : vector<2x256xf32>
    %108 = vector.extract_strided_slice %106 {offsets = [0, 0], sizes = [2, 64], strides = [1, 1]} : vector<2x256xf32> to vector<2x64xf32>
    %109 = vector.extract_strided_slice %106 {offsets = [0, 64], sizes = [2, 64], strides = [1, 1]} : vector<2x256xf32> to vector<2x64xf32>
    %110 = vector.extract_strided_slice %107 {offsets = [0, 128], sizes = [2, 64], strides = [1, 1]} : vector<2x256xf32> to vector<2x64xf32>
    %111 = vector.extract_strided_slice %106 {offsets = [0, 192], sizes = [2, 64], strides = [1, 1]} : vector<2x256xf32> to vector<2x64xf32>
    %112 = arith.mulf %109, %96 : vector<2x64xf32>
    %113 = arith.mulf %108, %110 : vector<2x64xf32>
    %114 = arith.addf %112, %113 : vector<2x64xf32>
    %115 = math.tanh %114 : vector<2x64xf32>
    %116 = arith.mulf %111, %115 : vector<2x64xf32>
    %117 = vector.extract_strided_slice %5 {offsets = [12, 0], sizes = [2, 256], strides = [1, 1]} : vector<16x256xf32> to vector<2x256xf32>
    %cst_21 = arith.constant dense<0.000000e+00> : vector<2x256xf32>
    %118 = tpu.matmul %116, %6, %cst_21 {dimension_numbers = #tpu.dot_dimension_numbers<[1], [0], [0], [1], [0, 0, 1, 1], [], []>} : vector<2x64xf32>, vector<64x256xf32>, vector<2x256xf32> -> vector<2x256xf32>
    %119 = arith.addf %117, %118 : vector<2x256xf32>
    %120 = arith.negf %119 : vector<2x256xf32>
    %121 = math.exp %120 : vector<2x256xf32>
    %cst_22 = arith.constant 1.000000e+00 : f32
    %122 = vector.broadcast %cst_22 : f32 to vector<2x256xf32>
    %123 = arith.addf %122, %121 : vector<2x256xf32>
    %124 = arith.divf %122, %123 : vector<2x256xf32>
    %125 = math.tanh %119 : vector<2x256xf32>
    %126 = vector.extract_strided_slice %124 {offsets = [0, 0], sizes = [2, 64], strides = [1, 1]} : vector<2x256xf32> to vector<2x64xf32>
    %127 = vector.extract_strided_slice %124 {offsets = [0, 64], sizes = [2, 64], strides = [1, 1]} : vector<2x256xf32> to vector<2x64xf32>
    %128 = vector.extract_strided_slice %125 {offsets = [0, 128], sizes = [2, 64], strides = [1, 1]} : vector<2x256xf32> to vector<2x64xf32>
    %129 = vector.extract_strided_slice %124 {offsets = [0, 192], sizes = [2, 64], strides = [1, 1]} : vector<2x256xf32> to vector<2x64xf32>
    %130 = arith.mulf %127, %114 : vector<2x64xf32>
    %131 = arith.mulf %126, %128 : vector<2x64xf32>
    %132 = arith.addf %130, %131 : vector<2x64xf32>
    %133 = math.tanh %132 : vector<2x64xf32>
    %134 = arith.mulf %129, %133 : vector<2x64xf32>
    %135 = vector.extract_strided_slice %5 {offsets = [14, 0], sizes = [2, 256], strides = [1, 1]} : vector<16x256xf32> to vector<2x256xf32>
    %cst_23 = arith.constant dense<0.000000e+00> : vector<2x256xf32>
    %136 = tpu.matmul %134, %6, %cst_23 {dimension_numbers = #tpu.dot_dimension_numbers<[1], [0], [0], [1], [0, 0, 1, 1], [], []>} : vector<2x64xf32>, vector<64x256xf32>, vector<2x256xf32> -> vector<2x256xf32>
    %137 = arith.addf %135, %136 : vector<2x256xf32>
    %138 = arith.negf %137 : vector<2x256xf32>
    %139 = math.exp %138 : vector<2x256xf32>
    %cst_24 = arith.constant 1.000000e+00 : f32
    %140 = vector.broadcast %cst_24 : f32 to vector<2x256xf32>
    %141 = arith.addf %140, %139 : vector<2x256xf32>
    %142 = arith.divf %140, %141 : vector<2x256xf32>
    %143 = math.tanh %137 : vector<2x256xf32>
    %144 = vector.extract_strided_slice %142 {offsets = [0, 0], sizes = [2, 64], strides = [1, 1]} : vector<2x256xf32> to vector<2x64xf32>
    %145 = vector.extract_strided_slice %142 {offsets = [0, 64], sizes = [2, 64], strides = [1, 1]} : vector<2x256xf32> to vector<2x64xf32>
    %146 = vector.extract_strided_slice %143 {offsets = [0, 128], sizes = [2, 64], strides = [1, 1]} : vector<2x256xf32> to vector<2x64xf32>
    %147 = vector.extract_strided_slice %142 {offsets = [0, 192], sizes = [2, 64], strides = [1, 1]} : vector<2x256xf32> to vector<2x64xf32>
    %148 = arith.mulf %145, %132 : vector<2x64xf32>
    %149 = arith.mulf %144, %146 : vector<2x64xf32>
    %150 = arith.addf %148, %149 : vector<2x64xf32>
    %151 = math.tanh %150 : vector<2x64xf32>
    %152 = arith.mulf %147, %151 : vector<2x64xf32>
    %153 = vector.extract_strided_slice %152 {offsets = [0, 0], sizes = [2, 32], strides = [1, 1]} : vector<2x64xf32> to vector<2x32xf32>
    %c0_25 = arith.constant 0 : index
    %c0_26 = arith.constant 0 : index
    %c0_27 = arith.constant 0 : index
    %154 = vector.load %arg13[%c0_25, %c0_26, %c0_27] : memref<2x2x32xf32, #tpu.memory_space<vmem>>, vector<1x2x32xf32>
    %155 = vector.shape_cast %154 : vector<1x2x32xf32> to vector<2x32xf32>
    %156 = vector.shape_cast %153 : vector<2x32xf32> to vector<1x2x32xf32>
    tpu.vector_store %arg13[%c0_25, %c0_26, %c0_27], %156 {strides = array<i32>} : memref<2x2x32xf32, #tpu.memory_space<vmem>>, vector<1x2x32xf32>,
    %157 = vector.extract_strided_slice %152 {offsets = [0, 32], sizes = [2, 32], strides = [1, 1]} : vector<2x64xf32> to vector<2x32xf32>
    %c1 = arith.constant 1 : index
    %c0_28 = arith.constant 0 : index
    %c0_29 = arith.constant 0 : index
    %158 = vector.load %arg13[%c1, %c0_28, %c0_29] : memref<2x2x32xf32, #tpu.memory_space<vmem>>, vector<1x2x32xf32>
    %159 = vector.shape_cast %158 : vector<1x2x32xf32> to vector<2x32xf32>
    %160 = vector.shape_cast %157 : vector<2x32xf32> to vector<1x2x32xf32>
    tpu.vector_store %arg13[%c1, %c0_28, %c0_29], %160 {strides = array<i32>} : memref<2x2x32xf32, #tpu.memory_space<vmem>>, vector<1x2x32xf32>,
    %161 = vector.extract_strided_slice %150 {offsets = [0, 0], sizes = [2, 32], strides = [1, 1]} : vector<2x64xf32> to vector<2x32xf32>
    %c0_30 = arith.constant 0 : index
    %c0_31 = arith.constant 0 : index
    %c0_32 = arith.constant 0 : index
    %162 = vector.load %arg14[%c0_30, %c0_31, %c0_32] : memref<2x2x32xf32, #tpu.memory_space<vmem>>, vector<1x2x32xf32>
    %163 = vector.shape_cast %162 : vector<1x2x32xf32> to vector<2x32xf32>
    %164 = vector.shape_cast %161 : vector<2x32xf32> to vector<1x2x32xf32>
    tpu.vector_store %arg14[%c0_30, %c0_31, %c0_32], %164 {strides = array<i32>} : memref<2x2x32xf32, #tpu.memory_space<vmem>>, vector<1x2x32xf32>,
    %165 = vector.extract_strided_slice %150 {offsets = [0, 32], sizes = [2, 32], strides = [1, 1]} : vector<2x64xf32> to vector<2x32xf32>
    %c1_33 = arith.constant 1 : index
    %c0_34 = arith.constant 0 : index
    %c0_35 = arith.constant 0 : index
    %166 = vector.load %arg14[%c1_33, %c0_34, %c0_35] : memref<2x2x32xf32, #tpu.memory_space<vmem>>, vector<1x2x32xf32>
    %167 = vector.shape_cast %166 : vector<1x2x32xf32> to vector<2x32xf32>
    %168 = vector.shape_cast %165 : vector<2x32xf32> to vector<1x2x32xf32>
    tpu.vector_store %arg14[%c1_33, %c0_34, %c0_35], %168 {strides = array<i32>} : memref<2x2x32xf32, #tpu.memory_space<vmem>>, vector<1x2x32xf32>,
    %169 = vector.extract_strided_slice %26 {offsets = [0, 0], sizes = [2, 32], strides = [1, 1]} : vector<2x64xf32> to vector<2x32xf32>
    %170 = vector.extract_strided_slice %152 {offsets = [0, 32], sizes = [2, 32], strides = [1, 1]} : vector<2x64xf32> to vector<2x32xf32>
    %171 = tpu.concatenate %169, %170 in 1 : vector<2x32xf32>, vector<2x32xf32> -> vector<2x64xf32>
    %172 = vector.extract_strided_slice %44 {offsets = [0, 0], sizes = [2, 32], strides = [1, 1]} : vector<2x64xf32> to vector<2x32xf32>
    %173 = vector.extract_strided_slice %134 {offsets = [0, 32], sizes = [2, 32], strides = [1, 1]} : vector<2x64xf32> to vector<2x32xf32>
    %174 = tpu.concatenate %172, %173 in 1 : vector<2x32xf32>, vector<2x32xf32> -> vector<2x64xf32>
    %175 = vector.extract_strided_slice %62 {offsets = [0, 0], sizes = [2, 32], strides = [1, 1]} : vector<2x64xf32> to vector<2x32xf32>
    %176 = vector.extract_strided_slice %116 {offsets = [0, 32], sizes = [2, 32], strides = [1, 1]} : vector<2x64xf32> to vector<2x32xf32>
    %177 = tpu.concatenate %175, %176 in 1 : vector<2x32xf32>, vector<2x32xf32> -> vector<2x64xf32>
    %178 = vector.extract_strided_slice %80 {offsets = [0, 0], sizes = [2, 32], strides = [1, 1]} : vector<2x64xf32> to vector<2x32xf32>
    %179 = vector.extract_strided_slice %98 {offsets = [0, 32], sizes = [2, 32], strides = [1, 1]} : vector<2x64xf32> to vector<2x32xf32>
    %180 = tpu.concatenate %178, %179 in 1 : vector<2x32xf32>, vector<2x32xf32> -> vector<2x64xf32>
    %181 = vector.extract_strided_slice %98 {offsets = [0, 0], sizes = [2, 32], strides = [1, 1]} : vector<2x64xf32> to vector<2x32xf32>
    %182 = vector.extract_strided_slice %80 {offsets = [0, 32], sizes = [2, 32], strides = [1, 1]} : vector<2x64xf32> to vector<2x32xf32>
    %183 = tpu.concatenate %181, %182 in 1 : vector<2x32xf32>, vector<2x32xf32> -> vector<2x64xf32>
    %184 = vector.extract_strided_slice %116 {offsets = [0, 0], sizes = [2, 32], strides = [1, 1]} : vector<2x64xf32> to vector<2x32xf32>
    %185 = vector.extract_strided_slice %62 {offsets = [0, 32], sizes = [2, 32], strides = [1, 1]} : vector<2x64xf32> to vector<2x32xf32>
    %186 = tpu.concatenate %184, %185 in 1 : vector<2x32xf32>, vector<2x32xf32> -> vector<2x64xf32>
    %187 = vector.extract_strided_slice %134 {offsets = [0, 0], sizes = [2, 32], strides = [1, 1]} : vector<2x64xf32> to vector<2x32xf32>
    %188 = vector.extract_strided_slice %44 {offsets = [0, 32], sizes = [2, 32], strides = [1, 1]} : vector<2x64xf32> to vector<2x32xf32>
    %189 = tpu.concatenate %187, %188 in 1 : vector<2x32xf32>, vector<2x32xf32> -> vector<2x64xf32>
    %190 = vector.extract_strided_slice %152 {offsets = [0, 0], sizes = [2, 32], strides = [1, 1]} : vector<2x64xf32> to vector<2x32xf32>
    %191 = vector.extract_strided_slice %26 {offsets = [0, 32], sizes = [2, 32], strides = [1, 1]} : vector<2x64xf32> to vector<2x32xf32>
    %192 = tpu.concatenate %190, %191 in 1 : vector<2x32xf32>, vector<2x32xf32> -> vector<2x64xf32>
    %193 = vector.shape_cast %171 : vector<2x64xf32> to vector<2x1x64xf32>
    %194 = vector.shape_cast %174 : vector<2x64xf32> to vector<2x1x64xf32>
    %195 = vector.shape_cast %177 : vector<2x64xf32> to vector<2x1x64xf32>
    %196 = vector.shape_cast %180 : vector<2x64xf32> to vector<2x1x64xf32>
    %197 = vector.shape_cast %183 : vector<2x64xf32> to vector<2x1x64xf32>
    %198 = vector.shape_cast %186 : vector<2x64xf32> to vector<2x1x64xf32>
    %199 = vector.shape_cast %189 : vector<2x64xf32> to vector<2x1x64xf32>
    %200 = vector.shape_cast %192 : vector<2x64xf32> to vector<2x1x64xf32>
    %201 = tpu.concatenate %193, %194, %195, %196, %197, %198, %199, %200 in 1 : vector<2x1x64xf32>, vector<2x1x64xf32>, vector<2x1x64xf32>, vector<2x1x64xf32>, vector<2x1x64xf32>, vector<2x1x64xf32>, vector<2x1x64xf32>, vector<2x1x64xf32> -> vector<2x8x64xf32>
    %c0_36 = arith.constant 0 : index
    %c0_37 = arith.constant 0 : index
    %c0_38 = arith.constant 0 : index
    %202 = vector.load %arg12[%c0_36, %c0_37, %c0_38] : memref<2x8x64xf32, #tpu.memory_space<vmem>>, vector<2x8x64xf32>
    tpu.vector_store %arg12[%c0_36, %c0_37, %c0_38], %201 {strides = array<i32>} : memref<2x8x64xf32, #tpu.memory_space<vmem>>, vector<2x8x64xf32>,
    %c0_39 = arith.constant 0 : index
    %c0_40 = arith.constant 0 : index
    %203 = vector.load %arg1[%c0_39, %c0_40] : memref<2x32xf32, #tpu.memory_space<vmem>>, vector<2x32xf32>
    %c0_41 = arith.constant 0 : index
    %c0_42 = arith.constant 0 : index
    %204 = vector.load %arg5[%c0_41, %c0_42] : memref<32x32xf32, #tpu.memory_space<vmem>>, vector<32x32xf32>
    %cst_43 = arith.constant dense<0.000000e+00> : vector<2x32xf32>
    %205 = tpu.matmul %203, %204, %cst_43 {dimension_numbers = #tpu.dot_dimension_numbers<[1], [0], [0], [1], [0, 0, 1, 1], [], []>} : vector<2x32xf32>, vector<32x32xf32>, vector<2x32xf32> -> vector<2x32xf32>
    %c0_44 = arith.constant 0 : index
    %c0_45 = arith.constant 0 : index
    %206 = vector.load %arg6[%c0_44, %c0_45] : memref<1x32xf32, #tpu.memory_space<vmem>>, vector<1x32xf32>
    %207 = vector.broadcast %206 : vector<1x32xf32> to vector<2x32xf32>
    %208 = arith.addf %205, %207 : vector<2x32xf32>
    %209 = math.tanh %208 : vector<2x32xf32>
    %c0_46 = arith.constant 0 : index
    %c0_47 = arith.constant 0 : index
    %210 = vector.load %arg7[%c0_46, %c0_47] : memref<32x32xf32, #tpu.memory_space<vmem>>, vector<32x32xf32>
    %cst_48 = arith.constant dense<0.000000e+00> : vector<2x32xf32>
    %211 = tpu.matmul %209, %210, %cst_48 {dimension_numbers = #tpu.dot_dimension_numbers<[1], [0], [0], [1], [0, 0, 1, 1], [], []>} : vector<2x32xf32>, vector<32x32xf32>, vector<2x32xf32> -> vector<2x32xf32>
    %c0_49 = arith.constant 0 : index
    %c0_50 = arith.constant 0 : index
    %212 = vector.load %arg8[%c0_49, %c0_50] : memref<1x32xf32, #tpu.memory_space<vmem>>, vector<1x32xf32>
    %213 = vector.broadcast %212 : vector<1x32xf32> to vector<2x32xf32>
    %214 = arith.addf %211, %213 : vector<2x32xf32>
    %215 = math.tanh %214 : vector<2x32xf32>
    %216 = vector.extract_strided_slice %152 {offsets = [0, 0], sizes = [2, 32], strides = [1, 1]} : vector<2x64xf32> to vector<2x32xf32>
    %217 = vector.extract_strided_slice %152 {offsets = [0, 32], sizes = [2, 32], strides = [1, 1]} : vector<2x64xf32> to vector<2x32xf32>
    %218 = arith.addf %216, %217 : vector<2x32xf32>
    %c0_51 = arith.constant 0 : index
    %c0_52 = arith.constant 0 : index
    %219 = vector.load %arg9[%c0_51, %c0_52] : memref<32x32xf32, #tpu.memory_space<vmem>>, vector<32x32xf32>
    %cst_53 = arith.constant dense<0.000000e+00> : vector<2x32xf32>
    %220 = tpu.matmul %218, %219, %cst_53 {dimension_numbers = #tpu.dot_dimension_numbers<[1], [0], [0], [1], [0, 0, 1, 1], [], []>} : vector<2x32xf32>, vector<32x32xf32>, vector<2x32xf32> -> vector<2x32xf32>
    %c0_54 = arith.constant 0 : index
    %c0_55 = arith.constant 0 : index
    %221 = vector.load %arg10[%c0_54, %c0_55] : memref<1x32xf32, #tpu.memory_space<vmem>>, vector<1x32xf32>
    %222 = vector.broadcast %221 : vector<1x32xf32> to vector<2x32xf32>
    %223 = arith.addf %220, %222 : vector<2x32xf32>
    %224 = math.tanh %223 : vector<2x32xf32>
    %c0_56 = arith.constant 0 : index
    %c0_57 = arith.constant 0 : index
    %225 = vector.load %arg15[%c0_56, %c0_57] : memref<2x32xf32, #tpu.memory_space<vmem>>, vector<2x32xf32>
    tpu.vector_store %arg15[%c0_56, %c0_57], %209 {strides = array<i32>} : memref<2x32xf32, #tpu.memory_space<vmem>>, vector<2x32xf32>,
    %226 = arith.subf %215, %203 : vector<2x32xf32>
    %227 = arith.mulf %226, %226 : vector<2x32xf32>
    %228 = vector.shape_cast %227 : vector<2x32xf32> to vector<1x2x32xf32>
    %cst_58 = arith.constant dense<0.000000e+00> : vector<1xf32>
    %229 = vector.multi_reduction <add>, %228, %cst_58 [1, 2] : vector<1x2x32xf32> to vector<1xf32>
    %230 = vector.shape_cast %229 : vector<1xf32> to vector<1x1x1xf32>
    %231 = vector.extract %230[0, 0, 0] : f32 from vector<1x1x1xf32>
    %cst_59 = arith.constant 6.400000e+01 : f32
    %232 = arith.divf %231, %cst_59 : f32
    %233 = arith.subf %224, %209 : vector<2x32xf32>
    %234 = arith.mulf %233, %233 : vector<2x32xf32>
    %235 = vector.shape_cast %234 : vector<2x32xf32> to vector<1x2x32xf32>
    %cst_60 = arith.constant dense<0.000000e+00> : vector<1xf32>
    %236 = vector.multi_reduction <add>, %235, %cst_60 [1, 2] : vector<1x2x32xf32> to vector<1xf32>
    %237 = vector.shape_cast %236 : vector<1xf32> to vector<1x1x1xf32>
    %238 = vector.extract %237[0, 0, 0] : f32 from vector<1x1x1xf32>
    %cst_61 = arith.constant 6.400000e+01 : f32
    %239 = arith.divf %238, %cst_61 : f32
    %240 = arith.addf %232, %239 : f32
    %241 = vector.broadcast %240 : f32 to vector<1x1xf32>
    %c0_62 = arith.constant 0 : index
    %c0_63 = arith.constant 0 : index
    %242 = vector.load %arg11[%c0_62, %c0_63] : memref<1x1xf32, #tpu.memory_space<vmem>>, vector<1x1xf32>
    tpu.vector_store %arg11[%c0_62, %c0_63], %241 {strides = array<i32>} : memref<1x1xf32, #tpu.memory_space<vmem>>, vector<1x1xf32>,
    return
  }
}

</mosaic_0001>

<bundles_post_ra>
// kernel: tpu_custom_call.1
= control target key start
LH: loop header
LB: loop body
LE: loop exit
PB: predicated region body
PF: predicated region fallthrough
CT: control target
= control target key end

     0   :  { %s3226_s0 = inlined_call_operand.hbm [shape: f32[16,32], index: 0, kind: input, shape index: {}]   ;;  %s3227_s1 = inlined_call_operand.vmem [shape: f32[2,32], index: 1, kind: input, shape index: {}]   ;;  %s3228_s2 = inlined_call_operand.hbm [shape: f32[32,256], index: 2, kind: input, shape index: {}]   ;;  %s3229_s3 = inlined_call_operand.hbm [shape: f32[64,256], index: 3, kind: input, shape index: {}]   ;;  %s3230_s4 = inlined_call_operand.hbm [shape: f32[1,256], index: 4, kind: input, shape index: {}]   ;;  %s3231_s5 = inlined_call_operand.hbm [shape: f32[32,32], index: 5, kind: input, shape index: {}]   ;;  %s3232_s6 = inlined_call_operand.hbm [shape: f32[1,32], index: 6, kind: input, shape index: {}]   ;;  %s3233_s7 = inlined_call_operand.hbm [shape: f32[32,32], index: 7, kind: input, shape index: {}]   ;;  %s3234_s8 = inlined_call_operand.hbm [shape: f32[1,32], index: 8, kind: input, shape index: {}]   ;;  %s3235_s9 = inlined_call_operand.vmem [shape: f32[32,32], index: 9, kind: input, shape index: {}]   ;;  %s3236_s10 = inlined_call_operand.vmem [shape: f32[1,32], index: 10, kind: input, shape index: {}]   ;;  %s3237_s11 = inlined_call_operand.hbm [shape: f32[1,1], index: 11, kind: output, shape index: {0}]   ;;  %s3238_s12 = inlined_call_operand.hbm [shape: f32[2,8,64], index: 12, kind: output, shape index: {1}]   ;;  %s3239_s13 = inlined_call_operand.hbm [shape: f32[2,2,32], index: 13, kind: output, shape index: {2}]   ;;  %s3240_s14 = inlined_call_operand.hbm [shape: f32[2,2,32], index: 14, kind: output, shape index: {3}]   ;;  %s3241_s15 = inlined_call_operand.hbm [shape: f32[2,32], index: 15, kind: output, shape index: {4}]  }
   0x1   :  { %3243 = sst [smem:[#allocation31_spill]] %s3237_s11 }
   0x2   :  { %21 = vsyncpa [#allocation3], 0 }
   0x3   :  { %22 = vsyncpa [#allocation6], 0 }
   0x4   :  { %23 = vsyncpa [#allocation9], 0 }
   0x5   :  { %24 = vsyncpa [#allocation12], 0 }
   0x6   :  { %25 = vsyncpa [#allocation15], 0 }
   0x7   :  { %26 = vsyncpa [#allocation4], 0 }
   0x8   :  { %27 = vsyncpa [#allocation18], 0 }
   0x9   :  { %28 = vsyncpa [#allocation21], 0  ;;  %s2542_s18 = smov [#allocation5]   ;;  %s2240_s22 = scalar_lea.hbm %s3228_s2, 1024 }
   0xa   :  { %s48_s19 = sshll.u32 %s2542_s18, 4  ;;  %p2241_p0 = scmp.ne.s32.totalorder %s3228_s2, %s2240_s22  ;;  %s49_s19 = int_to_ptr.vmem [resolvable:$true] %s48_s19 }
   0xb   :  { %p2244_p1 = scmp.lt.u32.totalorder %s2240_s22, %s3228_s2 }
   0xd   :  { %p2246_p2 = pnand %p2244_p1, %p2241_p0 }
   0xf   :  { %2249 = shalt.err (!%p2246_p2)
}
  0x10   :  { %s2250_s27 = scalar_lea.vmem %s49_s19, 1024  ;;  %p2255_p4 = scmp.lt.s32.totalorder %s49_s19, %s49_s19 }
  0x11   :  { %p2251_p3 = scmp.ne.s32.totalorder %s49_s19, %s2250_s27  ;;  %p2256_p5 = scmp.lt.s32.totalorder %s2250_s27, %s2250_s27 }
  0x13   :  { %p2257_p6 = por %p2256_p5, %p2255_p4 }
  0x15   :  { %p2258_p7 = pnand %p2257_p6, %p2251_p3 }
  0x17   :  { %2261 = shalt.err (!%p2258_p7)
}
  0x18   :  { %s2543_s28 = smov 256   ;;  %s2544_s29 = smov 16  }
  0x19   :  { %54 = dma.hbm_to_vmem [thread:$0]  %s3228_s2, 1024, %s49_s19, [#allocation6], %s2543_s28, %s2543_s28, %s2544_s29  }
  0x1a   :  { %s2545_s17 = smov [#allocation8]   ;;  %s2546_s20 = smov [#allocation11]  }
  0x1b   :  { %s73_s18 = sshll.u32 %s2545_s17, 4  ;;  %s95_s21 = sshll.u32 %s2546_s20, 4  ;;  %s74_s18 = int_to_ptr.vmem [resolvable:$true] %s73_s18  ;;  %s96_s21 = int_to_ptr.vmem [resolvable:$true] %s95_s21 }
  0x1c   :  { %s2262_s24 = scalar_lea.hbm %s3230_s4, 32 }
  0x1d   :  { %p2263_p8 = scmp.ne.s32.totalorder %s3230_s4, %s2262_s24  ;;  %p2266_p9 = scmp.lt.u32.totalorder %s2262_s24, %s3230_s4 }
  0x1f   :  { %p2268_p10 = pnand %p2266_p9, %p2263_p8 }
  0x21   :  { %2271 = shalt.err (!%p2268_p10)
}
  0x22   :  { %s2272_s2 = scalar_lea.vmem %s74_s18, 32  ;;  %p2277_p12 = scmp.lt.s32.totalorder %s74_s18, %s74_s18 }
  0x23   :  { %p2273_p11 = scmp.ne.s32.totalorder %s74_s18, %s2272_s2  ;;  %p2278_p13 = scmp.lt.s32.totalorder %s2272_s2, %s2272_s2 }
  0x25   :  { %p2279_p0 = por %p2278_p13, %p2277_p12 }
  0x27   :  { %p2280_p1 = pnand %p2279_p0, %p2273_p11 }
  0x29   :  { %2283 = shalt.err (!%p2280_p1)
}
  0x2a   :  { %76 = dma.hbm_to_vmem [thread:$0]  %s3230_s4, 32, %s74_s18, [#allocation9]  }
  0x2b   :  { %s2284_s20 = scalar_lea.hbm %s3232_s6, 16 }
  0x2c   :  { %p2285_p2 = scmp.ne.s32.totalorder %s3232_s6, %s2284_s20  ;;  %p2288_p3 = scmp.lt.u32.totalorder %s2284_s20, %s3232_s6 }
  0x2e   :  { %p2290_p4 = pnand %p2288_p3, %p2285_p2 }
  0x30   :  { %2293 = shalt.err (!%p2290_p4)
}
  0x31   :  { %s2294_s25 = scalar_lea.vmem %s96_s21, 16  ;;  %s2298_s26 = scalar_lea.vmem %s96_s21, 32 }
  0x32   :  { %p2295_p5 = scmp.ne.s32.totalorder %s96_s21, %s2294_s25  ;;  %p2299_p6 = scmp.lt.s32.totalorder %s96_s21, %s96_s21 }
  0x33   :  { %p2300_p7 = scmp.lt.s32.totalorder %s2298_s26, %s2294_s25 }
  0x35   :  { %p2301_p8 = por %p2300_p7, %p2299_p6 }
  0x37   :  { %p2302_p9 = pnand %p2301_p8, %p2295_p5 }
  0x39   :  { %2305 = shalt.err (!%p2302_p9)
}
  0x3a   :  { %98 = dma.hbm_to_vmem [thread:$0]  %s3232_s6, 16, %s96_s21, [#allocation12]  }
  0x3b   :  { %s2547_s27 = smov [#allocation2]   ;;  %s2306_s16 = scalar_lea.hbm %s3226_s0, 256 }
  0x3c   :  { %s34_s2 = sshll.u32 %s2547_s27, 4  ;;  %p2307_p10 = scmp.ne.s32.totalorder %s3226_s0, %s2306_s16  ;;  %s35_s2 = int_to_ptr.vmem [resolvable:$true] %s34_s2 }
  0x3d   :  { %p2310_p11 = scmp.lt.u32.totalorder %s2306_s16, %s3226_s0 }
  0x3f   :  { %p2312_p12 = pnand %p2310_p11, %p2307_p10 }
  0x41   :  { %2315 = shalt.err (!%p2312_p12)
}
  0x42   :  { %s2316_s23 = scalar_lea.vmem %s35_s2, 256  ;;  %p2321_p0 = scmp.lt.s32.totalorder %s35_s2, %s35_s2 }
  0x43   :  { %p2317_p13 = scmp.ne.s32.totalorder %s35_s2, %s2316_s23  ;;  %p2322_p1 = scmp.lt.s32.totalorder %s2316_s23, %s2316_s23 }
  0x45   :  { %p2323_p2 = por %p2322_p1, %p2321_p0 }
  0x47   :  { %p2324_p3 = pnand %p2323_p2, %p2317_p13 }
  0x49   :  { %2327 = shalt.err (!%p2324_p3)
}
  0x4a   :  { %s2548_s6 = smov 128   ;;  %s2549_s21 = smov 8  }
  0x4b   :  { %40 = dma.hbm_to_vmem [thread:$0]  %s3226_s0, 256, %s35_s2, [#allocation3], %s2548_s6, %s2548_s6, %s2549_s21  }
  0x4c   :  { %s2550_s26 = smov [#allocation7]   ;;  %s2551_s18 = smov [#allocation10]  }
  0x4d   :  { %s60_s4 = sshll.u32 %s2550_s26, 4  ;;  %s82_s27 = sshll.u32 %s2551_s18, 4  ;;  %s61_s4 = int_to_ptr.vmem [resolvable:$true] %s60_s4  ;;  %s2701_s27 = int_to_ptr.vmem [resolvable:$true] %s82_s27 }
  0x4e   :  { %s2328_s16 = scalar_lea.hbm %s3229_s3, 2048 }
  0x4f   :  { %p2329_p4 = scmp.ne.s32.totalorder %s3229_s3, %s2328_s16  ;;  %p2332_p5 = scmp.lt.u32.totalorder %s2328_s16, %s3229_s3 }
  0x51   :  { %p2334_p6 = pnand %p2332_p5, %p2329_p4 }
  0x53   :  { %2337 = shalt.err (!%p2334_p6)
}
  0x54   :  { %s2338_s0 = scalar_lea.vmem %s61_s4, 2048  ;;  %p2343_p8 = scmp.lt.s32.totalorder %s61_s4, %s61_s4 }
  0x55   :  { %p2339_p7 = scmp.ne.s32.totalorder %s61_s4, %s2338_s0  ;;  %p2344_p9 = scmp.lt.s32.totalorder %s2338_s0, %s2338_s0 }
  0x57   :  { %p2345_p10 = por %p2344_p9, %p2343_p8 }
  0x59   :  { %p2346_p11 = pnand %p2345_p10, %p2339_p7 }
  0x5b   :  { %2349 = shalt.err (!%p2346_p11)
}
  0x5c   :  { %66 = dma.hbm_to_vmem [thread:$0]  %s3229_s3, 2048, %s61_s4, [#allocation6], %s2543_s28, %s2543_s28, %s2544_s29  }
  0x5d   :  { %s2350_s26 = scalar_lea.hbm %s3231_s5, 512 }
  0x5e   :  { %p2351_p12 = scmp.ne.s32.totalorder %s3231_s5, %s2350_s26  ;;  %p2354_p13 = scmp.lt.u32.totalorder %s2350_s26, %s3231_s5 }
  0x60   :  { %p2356_p0 = pnand %p2354_p13, %p2351_p12 }
  0x62   :  { %2359 = shalt.err (!%p2356_p0)
}
  0x63   :  { %s2360_s17 = scalar_lea.vmem %s2701_s27, 512  ;;  %p2365_p2 = scmp.lt.s32.totalorder %s2701_s27, %s2701_s27 }
  0x64   :  { %p2361_p1 = scmp.ne.s32.totalorder %s2701_s27, %s2360_s17  ;;  %p2366_p3 = scmp.lt.s32.totalorder %s2360_s17, %s2360_s17 }
  0x66   :  { %p2367_p4 = por %p2366_p3, %p2365_p2 }
  0x68   :  { %p2368_p5 = pnand %p2367_p4, %p2361_p1 }
  0x6a   :  { %2371 = shalt.err (!%p2368_p5)
}
  0x6b   :  { %88 = dma.hbm_to_vmem [thread:$0]  %s3231_s5, 512, %s2701_s27, [#allocation9], %s2548_s6, %s2548_s6, %s2549_s21  }
  0x6c   :  { %s2552_s29 = smov [#allocation13]   ;;  %s2553_s20 = smov [#allocation14]  }
  0x6d   :  { %s104_s4 = sshll.u32 %s2552_s29, 4  ;;  %s117_s11 = sshll.u32 %s2553_s20, 4  ;;  %s105_s4 = int_to_ptr.vmem [resolvable:$true] %s104_s4  ;;  %s118_s11 = int_to_ptr.vmem [resolvable:$true] %s117_s11 }
  0x6e   :  { %s2372_s2 = scalar_lea.hbm %s3233_s7, 512 }
  0x6f   :  { %p2373_p6 = scmp.ne.s32.totalorder %s3233_s7, %s2372_s2  ;;  %p2376_p7 = scmp.lt.u32.totalorder %s2372_s2, %s3233_s7 }
  0x71   :  { %p2378_p8 = pnand %p2376_p7, %p2373_p6 }
  0x73   :  { %2381 = shalt.err (!%p2378_p8)
}
  0x74   :  { %s2382_s5 = scalar_lea.vmem %s105_s4, 512  ;;  %p2387_p10 = scmp.lt.s32.totalorder %s105_s4, %s105_s4 }
  0x75   :  { %p2383_p9 = scmp.ne.s32.totalorder %s105_s4, %s2382_s5  ;;  %p2388_p11 = scmp.lt.s32.totalorder %s2382_s5, %s2382_s5 }
  0x77   :  { %p2389_p12 = por %p2388_p11, %p2387_p10 }
  0x79   :  { %p2390_p13 = pnand %p2389_p12, %p2383_p9 }
  0x7b   :  { %2393 = shalt.err (!%p2390_p13)
}
  0x7c   :  { %110 = dma.hbm_to_vmem [thread:$0]  %s3233_s7, 512, %s105_s4, [#allocation12], %s2548_s6, %s2548_s6, %s2549_s21  }
  0x7d   :  { %s2394_s16 = scalar_lea.hbm %s3234_s8, 16 }
  0x7e   :  { %p2395_p0 = scmp.ne.s32.totalorder %s3234_s8, %s2394_s16  ;;  %p2398_p1 = scmp.lt.u32.totalorder %s2394_s16, %s3234_s8 }
  0x80   :  { %p2400_p2 = pnand %p2398_p1, %p2395_p0 }
  0x82   :  { %2403 = shalt.err (!%p2400_p2)
}
  0x83   :  { %s2404_s20 = scalar_lea.vmem %s118_s11, 16  ;;  %s2408_s22 = scalar_lea.vmem %s118_s11, 32 }
  0x84   :  { %p2405_p3 = scmp.ne.s32.totalorder %s118_s11, %s2404_s20  ;;  %p2409_p4 = scmp.lt.s32.totalorder %s118_s11, %s118_s11 }
  0x85   :  { %p2410_p5 = scmp.lt.s32.totalorder %s2408_s22, %s2404_s20 }
  0x87   :  { %p2411_p6 = por %p2410_p5, %p2409_p4 }
  0x89   :  { %p2412_p7 = pnand %p2411_p6, %p2405_p3 }
  0x8b   :  { %2415 = shalt.err (!%p2412_p7)
}
  0x8c   :  { %120 = dma.hbm_to_vmem [thread:$0]  %s3234_s8, 16, %s118_s11, [#allocation15]  }
  0x8d   :  { %2526 = dma.done.wait [#allocation3], 256  }
  0x8e   :  { %2527 = vsyncadd [#allocation3], 4294967040 }
  0x8f   :  { %2528 = dma.done.wait [#allocation6], 3072  }
  0x90   :  { %2529 = vsyncadd [#allocation6], 4294964224 }
  0x91   :  { %2530 = dma.done.wait [#allocation9], 544  }
  0x92   :  { %2531 = vsyncadd [#allocation9], 4294966752 }
  0x93   :  { %2532 = dma.done.wait [#allocation12], 528  }
  0x94   :  { %2533 = vsyncadd [#allocation12], 4294966768 }
  0x95   :  { %2534 = dma.done.wait [#allocation15], 16  }
  0x96   :  { %2535 = vsyncadd [#allocation15], 4294967280  ;;  %v2554_v0 = vmov 0.0   ;;  %v256_v1 = vld [vmem:[#allocation7 + $0x8] sm:$0xff]  ;;  %v258_v2 = vld [vmem:[#allocation7 + $0x18] sm:$0xff]  ;;  %vm171_vm0 = vcmask 261120   ;;  %v161_v38 = vlaneseq }
  0x97   :  { %242 = vmatprep.mubr.f32.mxu0 %v2554_v0  ;;  %339 = vmatprep.mubr.f32.mxu1 %v2554_v0  ;;  %v255_v3 = vld [vmem:[#allocation7] sm:$0xff]  ;;  %v2767_v4 = vpack.c.bf16 %v258_v2, %v256_v1  ;;  %v257_v5 = vld [vmem:[#allocation7 + $0x10] sm:$0xff]  ;;  %v260_v6 = vld [vmem:[#allocation7 + $0x28] sm:$0xff]  ;;  %s2555_s8 = smov 64   ;;  %vm271_vm1 = vcmask 523264   ;;  %vm2557_vm2 = vmmov 0  }
  0x98   :  { %v262_v7 = vld [vmem:[#allocation7 + $0x38] sm:$0xff]  ;;  %v2769_v8 = vpack.c.bf16 %v257_v5, %v255_v3  ;;  %v152_v10 = vld [vmem:[#allocation5 + $0x8] sm:$0xff]  ;;  %v259_v12 = vld [vmem:[#allocation7 + $0x20] sm:$0xff]  ;;  %v2813_v39 = vshrl.u32 %v161_v38, 7  ;;  %vm1761_vm3 = vcmask 254976   ;;  %s2559_s2 = smov 32  }
  0x99   :  { %v2771_v9 = vpack.c.bf16 %v262_v7, %v260_v6  ;;  %v154_v11 = vld [vmem:[#allocation5 + $0x18] sm:$0xff]  ;;  %1964 = vmatprep.subr.bf16.mxu1 %v2767_v4  ;;  %v261_v14 = vld [vmem:[#allocation7 + $0x30] sm:$0xff]  ;;  %v151_v15 = vld [vmem:[#allocation5] sm:$0xff]  ;;  %vm1136_vm4 = vcmask 261126   ;;  %vm1475_vm5 = vcmask 1040384   ;;  %vm1478_vm6 = vcmask 1041408  }
  0x9a   :  { %v1955_v13 = vpack.c.bf16 %v154_v11, %v152_v10  ;;  %v153_v16 = vld [vmem:[#allocation5 + $0x10] sm:$0xff]  ;;  %1966 = vmatpush1.bf16.msra.mxu1 %v2769_v8  ;;  %v2775_v17 = vpack.c.bf16 %v261_v14, %v259_v12  ;;  %v264_v19 = vld [vmem:[#allocation7 + $0x48] sm:$0xff]  ;;  %v266_v20 = vld [vmem:[#allocation7 + $0x58] sm:$0xff]  ;;  %v2816_v40 = vsub.s32 0, %v2813_v39  ;;  %v167_v47 = vsub.s32 1, %v2813_v39  ;;  %s2562_s17 = smov [#allocation22]  }
  0x9b   :  { %v1957_v18 = vpack.c.bf16 %v153_v16, %v151_v15  ;;  %v156_v21 = vld [vmem:[#allocation5 + $0x28] sm:$0xff]  ;;  %1968 = vmatprep.subr.bf16.mxu1 %v2771_v9  ;;  %v2778_v22 = vpack.c.bf16 %v266_v20, %v264_v19  ;;  %v158_v23 = vld [vmem:[#allocation5 + $0x38] sm:$0xff]  ;;  %v263_v24 = vld [vmem:[#allocation7 + $0x40] sm:$0xff]  ;;  %vm1481_vm7 = vcmask 1042432   ;;  %s1849_s3 = sshll.u32 %s2562_s17, 4  ;;  %vm1484_vm8 = vcmask 1043456   ;;  %s3111_s3 = int_to_ptr.vmem [resolvable:$true] %s1849_s3 }
  0x9c   :  { %1956 = vmatprep.subr.bf16.mxu0 %v1955_v13  ;;  %v265_v25 = vld [vmem:[#allocation7 + $0x50] sm:$0xff]  ;;  %v1959_v26 = vpack.c.bf16 %v158_v23, %v156_v21  ;;  %v155_v27 = vld [vmem:[#allocation5 + $0x20] sm:$0xff]  ;;  %v268_v29 = vld [vmem:[#allocation7 + $0x68] sm:$0xff]  ;;  %vm1487_vm9 = vcmask 1044480  }
  0x9d   :  { %1958 = vmatpush1.bf16.msra.mxu0 %v1957_v18  ;;  %v157_v28 = vld [vmem:[#allocation5 + $0x30] sm:$0xff]  ;;  %v270_v31 = vld [vmem:[#allocation7 + $0x78] sm:$0xff]  ;;  %v2781_v32 = vpack.c.bf16 %v265_v25, %v263_v24  ;;  %v267_v34 = vld [vmem:[#allocation7 + $0x60] sm:$0xff] }
  0x9e   :  { %v1961_v30 = vpack.c.bf16 %v157_v28, %v155_v27  ;;  %1970 = vmatpush1.bf16.msra.mxu1 %v2775_v17  ;;  %1960 = vmatprep.subr.bf16.mxu0 %v1959_v26  ;;  %v2784_v33 = vpack.c.bf16 %v270_v31, %v268_v29  ;;  %v269_v35 = vld [vmem:[#allocation7 + $0x70] sm:$0xff]  ;;  %v159_v41 = vld [vmem:[#allocation8] sm:$0x3]  ;;  %v150_v59 = vld [vmem:[#allocation2 + $0x8] sm:$0xff] }
  0x9f   :  { %1972 = vmatprep.subr.bf16.mxu1 %v2778_v22  ;;  %v149_v36 = vld [vmem:[#allocation2] sm:$0xff]  ;;  %v2788_v37 = vpack.c.bf16 %v269_v35, %v267_v34  ;;  %v2819_v42 = vrot.slane %v159_v41, %v2816_v40  ;;  %v2826_v51 = vrot.slane %v159_v41, %v167_v47 }
  0xa1   :  { %1962 = vmatpush1.bf16.msra.mxu0 %v1961_v30 }
  0xa2   :  { %1980 = vmatprep.subr.bf16.mxu0 %v2767_v4  ;;  %1974 = vmatpush1.bf16.msra.mxu1 %v2781_v32 }
  0xa3   :  { %1976 = vmatprep.subr.bf16.mxu1 %v2784_v33 }
  0xa4   :  { %1876 = vmatmul.mubr.msk.f32.vlgmr.msra.gmra.mrb[0].mxu0 %vm171_vm0, %v149_v36 }
  0xa5   :  { %1982 = vmatpush1.bf16.msra.mxu0 %v2769_v8  ;;  %248 = vmatprep.mubr.f32.mxu0 %v2554_v0 }
  0xa6   :  { %1984 = vmatprep.subr.bf16.mxu0 %v2771_v9  ;;  %1978 = vmatpush1.bf16.msra.mxu1 %v2788_v37 }
  0xa7   :  { %1996 = vmatprep.subr.bf16.mxu1 %v2767_v4 }
  0xa8   :  { %1877 = vmatmul.mubr.msk.f32.gmra.mrb[2].mxu0 %vm171_vm0, %v150_v59 }
  0xa9   :  { %1986 = vmatpush1.bf16.msra.mxu0 %v2775_v17  ;;  %340 = vmatmul.mubr.f32.vlgmr.msra.gmra.mrb[0].mxu1 %v2554_v0 }
  0xaa   :  { %1988 = vmatprep.subr.bf16.mxu0 %v2778_v22  ;;  %1998 = vmatpush1.bf16.msra.mxu1 %v2769_v8 }
  0xab   :  { %549 = vmatprep.mubr.f32.mxu1 %v2554_v0  ;;  %2000 = vmatprep.subr.bf16.mxu1 %v2771_v9 }
  0xac   :  { %439 = vmatprep.mubr.f32.mxu0 %v2554_v0 }
  0xad   :  { %1990 = vmatpush1.bf16.msra.mxu0 %v2781_v32 }
  0xae   :  { %1992 = vmatprep.subr.bf16.mxu0 %v2784_v33  ;;  %2002 = vmatpush1.bf16.msra.mxu1 %v2775_v17 }
  0xaf   :  { %2004 = vmatprep.subr.bf16.mxu1 %v2778_v22 }
  0xb1   :  { %1994 = vmatpush1.bf16.msra.mxu0 %v2788_v37 }
  0xb2   :  { %2012 = vmatprep.subr.bf16.mxu0 %v2767_v4  ;;  %2006 = vmatpush1.bf16.msra.mxu1 %v2781_v32 }
  0xb3   :  { %2008 = vmatprep.subr.bf16.mxu1 %v2784_v33 }
  0xb6   :  { %2010 = vmatpush1.bf16.msra.mxu1 %v2788_v37 }
  0xb7   :  { %2028 = vmatprep.subr.bf16.mxu1 %v2767_v4 }
 0x177   :  { %v244_v43 = vpop.f32.mrb[0].mxu0 }
 0x178   :  { %v246_v44 = vpop.f32.mrb[1].mxu0  ;;  %v2822_v45 = vadd.f32 %v244_v43, %v2819_v42 }
 0x179   :  { %v2829_v52 = vadd.f32 %v246_v44, %v2826_v51 }
 0x17b   :  { %v2839_v7 = vpop.f32.mrb[2].mxu0 }
 0x17c   :  { %v341_v46 = vpop.f32.mrb[0].mxu1  ;;  %v2841_v10 = vpop.f32.mrb[3].mxu0 }
 0x17d   :  { %v346_v48 = vadd.f32 %v341_v46, %v2822_v45  ;;  %v343_v49 = vpop.f32.mrb[1].mxu1 }
 0x17e   :  { %v347_v53 = vadd.f32 %v343_v49, %v2829_v52 }
 0x17f   :  { %v1878_v50 = vmul.f32 -1.442695, %v346_v48 }
 0x180   :  { %v1879_v60 = vmul.f32 -1.442695, %v347_v53 }
 0x181   :  { %2138 = vpow2.f32 %v1878_v50 }
 0x182   :  { %2140 = vtanh.f32 %v347_v53 }
 0x18b   :  { %v2139_v54 = vpop.eup %2138 }
 0x18c   :  { %v354_v55 = vadd.f32 1.0, %v2139_v54  ;;  %v2141_v56 = vpop.eup %2140 }
 0x18e   :  { %2142 = vrcp.f32 %v354_v55 }
 0x18f   :  { %2144 = vpow2.f32 %v1879_v60 }
 0x198   :  { %v2143_v57 = vpop.eup %2142 }
 0x199   :  { %v362_v58 = vmul.f32 %v2143_v57, %v2141_v56  ;;  %v2145_v61 = vpop.eup %2144  ;;  %v361_v63 = vmul.f32 0.0, %v2143_v57 }
 0x19a   :  { %v355_v62 = vadd.f32 1.0, %v2145_v61 }
 0x19b   :  { %364 = vrot.lane.b32.xlu0 %v362_v58, %s2555_s8 }
 0x19c   :  { %2146 = vrcp.f32 %v355_v62 }
 0x1a6   :  { %v2147_v3 = vpop.eup %2146 }
 0x20d   :  { %v365_v1 = vpop.permute.xlu0 %364 }
 0x20e   :  { %v367_v2 = vadd.f32 %v365_v1, %v361_v63 }
 0x210   :  { %2148 = vtanh.f32 %v367_v2  ;;  %v468_v24 = vrot.slane %v367_v2, 6 }
 0x21a   :  { %v2149_v5 = vpop.eup %2148 }
 0x21b   :  { %v2835_v6 = vmul.f32 %v2149_v5, %v2147_v3 }
 0x21d   :  { %371 = vrot.lane.b32.xlu0 %v2835_v6, %s2555_s8 }
 0x28f   :  { %v2843_v11 = vpop.permute.xlu0 %371 }
 0x290   :  { %1880 = vmatmul.mubr.msk.f32.vlgmr.msra.gmra.mrb[4].mxu0 %vm271_vm1, %v2843_v11 }
 0x291   :  { %2014 = vmatpush1.bf16.msra.mxu0 %v2769_v8  ;;  %659 = vmatprep.mubr.f32.mxu0 %v2554_v0 }
 0x292   :  { %2016 = vmatprep.subr.bf16.mxu0 %v2771_v9 }
 0x295   :  { %2018 = vmatpush1.bf16.msra.mxu0 %v2775_v17 }
 0x296   :  { %2020 = vmatprep.subr.bf16.mxu0 %v2778_v22 }
 0x299   :  { %2022 = vmatpush1.bf16.msra.mxu0 %v2781_v32 }
 0x29a   :  { %2024 = vmatprep.subr.bf16.mxu0 %v2784_v33 }
 0x29d   :  { %2026 = vmatpush1.bf16.msra.mxu0 %v2788_v37 }
 0x29e   :  { %2044 = vmatprep.subr.bf16.mxu0 %v2767_v4 }
 0x363   :  { %v441_v12 = vpop.f32.mrb[4].mxu0 }
 0x364   :  { %v448_v13 = vrot.slane %v441_v12, 6  ;;  %v443_v14 = vpop.f32.mrb[5].mxu0 }
 0x365   :  { %v449_v18 = vrot.slane %v443_v14, 6 }
 0x366   :  { %v452_v15 = vadd.f32 %v448_v13, %v2822_v45 }
 0x367   :  { %v453_v19 = vadd.f32 %v449_v18, %v2829_v52 }
 0x368   :  { %v1881_v16 = vmul.f32 -1.442695, %v452_v15 }
 0x369   :  { %v1882_v28 = vmul.f32 -1.442695, %v453_v19 }
 0x36a   :  { %2150 = vpow2.f32 %v1881_v16 }
 0x36b   :  { %2152 = vtanh.f32 %v453_v19 }
 0x374   :  { %v2151_v20 = vpop.eup %2150 }
 0x375   :  { %v460_v21 = vadd.f32 1.0, %v2151_v20  ;;  %v2153_v23 = vpop.eup %2152 }
 0x377   :  { %2154 = vrcp.f32 %v460_v21 }
 0x378   :  { %2156 = vpow2.f32 %v1882_v28 }
 0x381   :  { %v2155_v25 = vpop.eup %2154 }
 0x382   :  { %v471_v26 = vmul.f32 %v2155_v25, %v2153_v23  ;;  %v470_v27 = vmul.f32 %v2155_v25, %v468_v24  ;;  %v2157_v29 = vpop.eup %2156 }
 0x383   :  { %v461_v30 = vadd.f32 1.0, %v2157_v29 }
 0x384   :  { %473 = vrot.lane.b32.xlu1 %v471_v26, %s2555_s8 }
 0x385   :  { %2158 = vrcp.f32 %v461_v30 }
 0x38f   :  { %v2159_v35 = vpop.eup %2158 }
 0x3f6   :  { %v474_v31 = vpop.permute.xlu1 %473 }
 0x3f7   :  { %v476_v34 = vadd.f32 %v474_v31, %v470_v27 }
 0x3f9   :  { %2160 = vtanh.f32 %v476_v34  ;;  %v578_v57 = vrot.slane %v476_v34, 6 }
 0x403   :  { %v2161_v36 = vpop.eup %2160 }
 0x404   :  { %v2859_v38 = vmul.f32 %v2161_v36, %v2159_v35 }
 0x406   :  { %v480_v41 = vrot.slane %v2859_v38, 2 }
 0x408   :  { %481 = vrot.lane.b32.xlu1 %v480_v41, %s2555_s8 }
 0x47a   :  { %v482_v43 = vpop.permute.xlu1 %481 }
 0x47b   :  { %1883 = vmatmul.mubr.msk.f32.vlgmr.msra.gmra.mrb[2].mxu1 %vm271_vm1, %v482_v43 }
 0x47c   :  { %2030 = vmatpush1.bf16.msra.mxu1 %v2769_v8  ;;  %769 = vmatprep.mubr.f32.mxu1 %v2554_v0 }
 0x47d   :  { %2032 = vmatprep.subr.bf16.mxu1 %v2771_v9 }
 0x480   :  { %2034 = vmatpush1.bf16.msra.mxu1 %v2775_v17 }
 0x481   :  { %2036 = vmatprep.subr.bf16.mxu1 %v2778_v22 }
 0x484   :  { %2038 = vmatpush1.bf16.msra.mxu1 %v2781_v32 }
 0x485   :  { %2040 = vmatprep.subr.bf16.mxu1 %v2784_v33 }
 0x488   :  { %2042 = vmatpush1.bf16.msra.mxu1 %v2788_v37 }
 0x489   :  { %2060 = vmatprep.subr.bf16.mxu1 %v2767_v4 }
 0x54e   :  { %v551_v44 = vpop.f32.mrb[2].mxu1 }
 0x54f   :  { %v558_v46 = vrot.slane %v551_v44, 4  ;;  %v553_v47 = vpop.f32.mrb[3].mxu1 }
 0x550   :  { %v559_v50 = vrot.slane %v553_v47, 4 }
 0x551   :  { %v562_v48 = vadd.f32 %v558_v46, %v2822_v45  ;;  %v2911_v46 = vadd.f32 %v2839_v7, %v2819_v42 }
 0x552   :  { %v563_v53 = vadd.f32 %v559_v50, %v2829_v52 }
 0x553   :  { %v1884_v49 = vmul.f32 -1.442695, %v562_v48 }
 0x554   :  { %v1885_v61 = vmul.f32 -1.442695, %v563_v53 }
 0x555   :  { %2162 = vpow2.f32 %v1884_v49 }
 0x556   :  { %2164 = vtanh.f32 %v563_v53  ;;  %v2916_v53 = vadd.f32 %v2841_v10, %v2826_v51 }
 0x55f   :  { %v2163_v54 = vpop.eup %2162 }
 0x560   :  { %v570_v55 = vadd.f32 1.0, %v2163_v54  ;;  %v2165_v56 = vpop.eup %2164 }
 0x562   :  { %2166 = vrcp.f32 %v570_v55 }
 0x563   :  { %2168 = vpow2.f32 %v1885_v61 }
 0x56c   :  { %v2167_v58 = vpop.eup %2166 }
 0x56d   :  { %v581_v59 = vmul.f32 %v2167_v58, %v2165_v56  ;;  %v580_v60 = vmul.f32 %v2167_v58, %v578_v57  ;;  %v2169_v62 = vpop.eup %2168 }
 0x56e   :  { %v571_v63 = vadd.f32 1.0, %v2169_v62 }
 0x56f   :  { %583 = vrot.lane.b32.xlu0 %v581_v59, %s2555_s8 }
 0x570   :  { %2170 = vrcp.f32 %v571_v63 }
 0x57a   :  { %v2171_v3 = vpop.eup %2170 }
 0x5e1   :  { %v584_v1 = vpop.permute.xlu0 %583 }
 0x5e2   :  { %v586_v2 = vadd.f32 %v584_v1, %v580_v60 }
 0x5e4   :  { %2172 = vtanh.f32 %v586_v2  ;;  %v688_v27 = vrot.slane %v586_v2, 6 }
 0x5ee   :  { %v2173_v5 = vpop.eup %2172 }
 0x5ef   :  { %v2876_v12 = vmul.f32 %v2173_v5, %v2171_v3 }
 0x5f1   :  { %v590_v13 = vrot.slane %v2876_v12, 4 }
 0x5f3   :  { %591 = vrot.lane.b32.xlu1 %v590_v13, %s2555_s8 }
 0x665   :  { %v592_v14 = vpop.permute.xlu1 %591 }
 0x666   :  { %1886 = vmatmul.mubr.msk.f32.vlgmr.msra.gmra.mrb[6].mxu0 %vm271_vm1, %v592_v14 }
 0x667   :  { %2046 = vmatpush1.bf16.msra.mxu0 %v2769_v8  ;;  %872 = vmatprep.mubr.f32.mxu0 %v2554_v0 }
 0x668   :  { %2048 = vmatprep.subr.bf16.mxu0 %v2771_v9 }
 0x66b   :  { %2050 = vmatpush1.bf16.msra.mxu0 %v2775_v17 }
 0x66c   :  { %2052 = vmatprep.subr.bf16.mxu0 %v2778_v22 }
 0x66f   :  { %2054 = vmatpush1.bf16.msra.mxu0 %v2781_v32 }
 0x670   :  { %2056 = vmatprep.subr.bf16.mxu0 %v2784_v33 }
 0x673   :  { %2058 = vmatpush1.bf16.msra.mxu0 %v2788_v37 }
 0x674   :  { %2076 = vmatprep.subr.bf16.mxu0 %v2767_v4 }
 0x739   :  { %v661_v15 = vpop.f32.mrb[6].mxu0 }
 0x73a   :  { %v668_v16 = vrot.slane %v661_v15, 2  ;;  %v663_v18 = vpop.f32.mrb[7].mxu0 }
 0x73b   :  { %v669_v21 = vrot.slane %v663_v18, 2 }
 0x73c   :  { %v672_v19 = vadd.f32 %v668_v16, %v2822_v45 }
 0x73d   :  { %v673_v23 = vadd.f32 %v669_v21, %v2829_v52 }
 0x73e   :  { %v1887_v20 = vmul.f32 -1.442695, %v672_v19 }
 0x73f   :  { %v1888_v4 = vmul.f32 -1.442695, %v673_v23 }
 0x740   :  { %2174 = vpow2.f32 %v1887_v20 }
 0x741   :  { %2176 = vtanh.f32 %v673_v23 }
 0x74a   :  { %v2175_v24 = vpop.eup %2174 }
 0x74b   :  { %v680_v25 = vadd.f32 1.0, %v2175_v24  ;;  %v2177_v26 = vpop.eup %2176 }
 0x74d   :  { %2178 = vrcp.f32 %v680_v25 }
 0x74e   :  { %2180 = vpow2.f32 %v1888_v4 }
 0x757   :  { %v2179_v28 = vpop.eup %2178 }
 0x758   :  { %v691_v29 = vmul.f32 %v2179_v28, %v2177_v26  ;;  %v690_v30 = vmul.f32 %v2179_v28, %v688_v27  ;;  %v2181_v31 = vpop.eup %2180 }
 0x759   :  { %v681_v45 = vadd.f32 1.0, %v2181_v31 }
 0x75a   :  { %693 = vrot.lane.b32.xlu0 %v691_v29, %s2555_s8 }
 0x75b   :  { %2182 = vrcp.f32 %v681_v45 }
 0x765   :  { %v2183_v52 = vpop.eup %2182 }
 0x7cc   :  { %v694_v34 = vpop.permute.xlu0 %693 }
 0x7cd   :  { %v696_v35 = vadd.f32 %v694_v34, %v690_v30 }
 0x7cf   :  { %2184 = vtanh.f32 %v696_v35  ;;  %v792_v58 = vrot.slane %v696_v35, 6 }
 0x7d9   :  { %v2185_v36 = vpop.eup %2184 }
 0x7da   :  { %v2893_v41 = vmul.f32 %v2185_v36, %v2183_v52 }
 0x7dc   :  { %v700_v43 = vrot.slane %v2893_v41, 6 }
 0x7de   :  { %701 = vrot.lane.b32.xlu1 %v700_v43, %s2555_s8 }
 0x850   :  { %v2897_v44 = vpop.permute.xlu1 %701 }
 0x851   :  { %1889 = vmatmul.mubr.msk.f32.vlgmr.msra.gmra.mrb[4].mxu1 %vm271_vm1, %v2897_v44 }
 0x852   :  { %2062 = vmatpush1.bf16.msra.mxu1 %v2769_v8  ;;  %982 = vmatprep.mubr.f32.mxu1 %v2554_v0 }
 0x853   :  { %2064 = vmatprep.subr.bf16.mxu1 %v2771_v9 }
 0x856   :  { %2066 = vmatpush1.bf16.msra.mxu1 %v2775_v17 }
 0x857   :  { %2068 = vmatprep.subr.bf16.mxu1 %v2778_v22 }
 0x85a   :  { %2070 = vmatpush1.bf16.msra.mxu1 %v2781_v32 }
 0x85b   :  { %2072 = vmatprep.subr.bf16.mxu1 %v2784_v33 }
 0x85e   :  { %2074 = vmatpush1.bf16.msra.mxu1 %v2788_v37 }
 0x924   :  { %v771_v47 = vpop.f32.mrb[4].mxu1 }
 0x925   :  { %v776_v48 = vadd.f32 %v771_v47, %v2911_v46  ;;  %v773_v49 = vpop.f32.mrb[5].mxu1 }
 0x926   :  { %v777_v54 = vadd.f32 %v773_v49, %v2916_v53 }
 0x927   :  { %v1890_v50 = vmul.f32 -1.442695, %v776_v48 }
 0x928   :  { %v1891_v60 = vmul.f32 -1.442695, %v777_v54 }
 0x929   :  { %2186 = vpow2.f32 %v1890_v50 }
 0x92a   :  { %2188 = vtanh.f32 %v777_v54 }
 0x933   :  { %v2187_v55 = vpop.eup %2186 }
 0x934   :  { %v784_v56 = vadd.f32 1.0, %v2187_v55  ;;  %v2189_v57 = vpop.eup %2188 }
 0x936   :  { %2190 = vrcp.f32 %v784_v56  ;;  %v1499_v56 = vld [vmem:[#allocation10] sm:$0xff] }
 0x937   :  { %2192 = vpow2.f32 %v1891_v60 }
 0x940   :  { %v2191_v42 = vpop.eup %2190 }
 0x941   :  { %v795_v7 = vmul.f32 %v2191_v42, %v2189_v57  ;;  %v794_v59 = vmul.f32 %v2191_v42, %v792_v58  ;;  %v2193_v61 = vpop.eup %2192  ;;  %v1500_v57 = vld [vmem:[#allocation10 + $0x8] sm:$0xff]  ;;  %v1501_v58 = vld [vmem:[#allocation10 + $0x10] sm:$0xff]  ;;  %v2556_v42 = vmov 0.0|0.0  }
 0x942   :  { %v785_v62 = vadd.f32 1.0, %v2193_v61  ;;  %2091 = vmatprep.subr.bf16.mxu1 %v2556_v42  ;;  %v2955_v61 = vld [vmem:[%s3227_s1] sm:$0x3]  ;;  %s2558_s1 = smov 96  }
 0x943   :  { %797 = vrot.lane.b32.xlu0 %v795_v7, %s2555_s8  ;;  %v2092_v7 = vpack.c.bf16 %v1500_v57, %v1499_v56  ;;  %v1903_v56 = vld [vmem:[#allocation14] ss:$0 sm:$0xff] }
 0x944   :  { %2194 = vrcp.f32 %v785_v62 }
 0x94e   :  { %v2195_v10 = vpop.eup %2194 }
 0x9b5   :  { %v798_v63 = vpop.permute.xlu0 %797 }
 0x9b6   :  { %v800_v51 = vadd.f32 %v798_v63, %v794_v59  ;;  %v1502_v59 = vld [vmem:[#allocation10 + $0x18] sm:$0xff] }
 0x9b7   :  { %v2095_v60 = vpack.c.bf16 %v1502_v59, %v1501_v58 }
 0x9b8   :  { %2196 = vtanh.f32 %v800_v51 }
 0x9c2   :  { %v2197_v1 = vpop.eup %2196 }
 0x9c3   :  { %v2920_v2 = vmul.f32 %v2197_v1, %v2195_v10 }
 0x9c5   :  { %804 = vrot.lane.b32.xlu1 %v2920_v2, %s2555_s8 }
 0xa37   :  { %v2924_v3 = vpop.permute.xlu1 %804 }
 0xa38   :  { %1892 = vmatmul.mubr.msk.f32.vlgmr.msra.gmra.mrb[8].mxu0 %vm271_vm1, %v2924_v3 }
 0xa39   :  { %2078 = vmatpush1.bf16.msra.mxu0 %v2769_v8  ;;  %1092 = vmatprep.mubr.f32.mxu0 %v2554_v0 }
 0xa3a   :  { %2080 = vmatprep.subr.bf16.mxu0 %v2771_v9 }
 0xa3d   :  { %2082 = vmatpush1.bf16.msra.mxu0 %v2775_v17 }
 0xa3e   :  { %2084 = vmatprep.subr.bf16.mxu0 %v2778_v22 }
 0xa41   :  { %2086 = vmatpush1.bf16.msra.mxu0 %v2781_v32  ;;  %v901_v32 = vrot.slane %v800_v51, 6 }
 0xa42   :  { %2088 = vmatprep.subr.bf16.mxu0 %v2784_v33 }
 0xa45   :  { %2090 = vmatpush1.bf16.msra.mxu0 %v2788_v37 }
 0xa46   :  { %2097 = vmatprep.subr.bf16.mxu0 %v2556_v42 }
 0xb0b   :  { %v874_v5 = vpop.f32.mrb[8].mxu0 }
 0xb0c   :  { %v881_v13 = vrot.slane %v874_v5, 6  ;;  %v876_v14 = vpop.f32.mrb[9].mxu0 }
 0xb0d   :  { %v882_v16 = vrot.slane %v876_v14, 6 }
 0xb0e   :  { %v885_v15 = vadd.f32 %v881_v13, %v2911_v46 }
 0xb0f   :  { %v886_v9 = vadd.f32 %v882_v16, %v2916_v53 }
 0xb10   :  { %v1893_v8 = vmul.f32 -1.442695, %v885_v15 }
 0xb11   :  { %v1894_v37 = vmul.f32 -1.442695, %v886_v9 }
 0xb12   :  { %2198 = vpow2.f32 %v1893_v8 }
 0xb13   :  { %2200 = vtanh.f32 %v886_v9  ;;  %v1901_v9 = vld [vmem:[#allocation11] ss:$0 sm:$0xff] }
 0xb1c   :  { %v2199_v18 = vpop.eup %2198 }
 0xb1d   :  { %v893_v17 = vadd.f32 1.0, %v2199_v18  ;;  %v2201_v22 = vpop.eup %2200 }
 0xb1f   :  { %2202 = vrcp.f32 %v893_v17  ;;  %v1584_v17 = vld [vmem:[#allocation13] sm:$0xff] }
 0xb20   :  { %2204 = vpow2.f32 %v1894_v37 }
 0xb29   :  { %v2203_v19 = vpop.eup %2202 }
 0xb2a   :  { %v904_v33 = vmul.f32 %v2203_v19, %v2201_v22  ;;  %v903_v20 = vmul.f32 %v2203_v19, %v901_v32  ;;  %v2205_v21 = vpop.eup %2204  ;;  %v1585_v22 = vld [vmem:[#allocation13 + $0x8] sm:$0xff]  ;;  %v1586_v19 = vld [vmem:[#allocation13 + $0x10] sm:$0xff] }
 0xb2b   :  { %v894_v23 = vadd.f32 1.0, %v2205_v21  ;;  %v2098_v32 = vpack.c.bf16 %v1585_v22, %v1584_v17 }
 0xb2c   :  { %906 = vrot.lane.b32.xlu0 %v904_v33, %s2555_s8  ;;  %v1587_v33 = vld [vmem:[#allocation13 + $0x18] sm:$0xff] }
 0xb2d   :  { %2206 = vrcp.f32 %v894_v23  ;;  %v2101_v37 = vpack.c.bf16 %v1587_v33, %v1586_v19 }
 0xb37   :  { %v2207_v26 = vpop.eup %2206 }
 0xb9e   :  { %v907_v24 = vpop.permute.xlu0 %906 }
 0xb9f   :  { %v909_v25 = vadd.f32 %v907_v24, %v903_v20 }
 0xba1   :  { %2208 = vtanh.f32 %v909_v25  ;;  %v1011_v49 = vrot.slane %v909_v25, 6 }
 0xbab   :  { %v2209_v27 = vpop.eup %2208 }
 0xbac   :  { %v2939_v28 = vmul.f32 %v2209_v27, %v2207_v26 }
 0xbae   :  { %v913_v29 = vrot.slane %v2939_v28, 2 }
 0xbb0   :  { %914 = vrot.lane.b32.xlu1 %v913_v29, %s2555_s8 }
 0xc22   :  { %v915_v30 = vpop.permute.xlu1 %914 }
 0xc23   :  { %1895 = vmatmul.mubr.msk.f32.vlgmr.msra.gmra.mrb[6].mxu1 %vm271_vm1, %v915_v30 }
 0xc24   :  { %1930 = vmatprep.mubr.msk.f32.mxu1 %vm2557_vm2, %v2554_v0  ;;  %2093 = vmatpush3.bf16.msra.mxu1 %v2092_v7 }
 0xc25   :  { %2094 = vmatprep.subr.bf16.mxu1 %v2556_v42 }
 0xc28   :  { %2096 = vmatpush3.bf16.msra.mxu1 %v2095_v60 }
 0xc29   :  { %2103 = vmatprep.subr.bf16.mxu1 %v2556_v42 }
 0xc2b   :  { %1931 = vmatmul.mubr.msk.f32.vlgmr.msra.gmra.mrb[8].mxu1 %vm171_vm0, %v2955_v61 }
 0xc2c   :  { %1952 = vmatprep.mubr.msk.f32.mxu1 %vm2557_vm2, %v2554_v0 }
 0xcf6   :  { %v984_v4 = vpop.f32.mrb[6].mxu1 }
 0xcf7   :  { %v991_v31 = vrot.slane %v984_v4, 4  ;;  %v986_v45 = vpop.f32.mrb[7].mxu1 }
 0xcf8   :  { %v992_v52 = vrot.slane %v986_v45, 4 }
 0xcf9   :  { %v995_v34 = vadd.f32 %v991_v31, %v2911_v46 }
 0xcfa   :  { %v996_v36 = vadd.f32 %v992_v52, %v2916_v53 }
 0xcfb   :  { %v1896_v35 = vmul.f32 -1.442695, %v995_v34 }
 0xcfc   :  { %v1897_v62 = vmul.f32 -1.442695, %v996_v36 }
 0xcfd   :  { %2210 = vpow2.f32 %v1896_v35 }
 0xcfe   :  { %2212 = vtanh.f32 %v996_v36  ;;  %v1579_v8 = vpop.f32.mrb[8].mxu1 }
 0xcff   :  { %v1932_v16 = vpop.f32.mrb[9].mxu1  ;;  %v1580_v18 = vadd.f32 %v1901_v9, %v1579_v8 }
 0xd07   :  { %v2211_v43 = vpop.eup %2210 }
 0xd08   :  { %v1003_v47 = vadd.f32 1.0, %v2211_v43  ;;  %v2213_v48 = vpop.eup %2212 }
 0xd0a   :  { %2214 = vrcp.f32 %v1003_v47 }
 0xd0b   :  { %2216 = vpow2.f32 %v1897_v62 }
 0xd14   :  { %v2215_v50 = vpop.eup %2214 }
 0xd15   :  { %v1014_v54 = vmul.f32 %v2215_v50, %v2213_v48  ;;  %v1013_v55 = vmul.f32 %v2215_v50, %v1011_v49  ;;  %v2217_v63 = vpop.eup %2216 }
 0xd16   :  { %v1004_v51 = vadd.f32 1.0, %v2217_v63  ;;  %v1197_v63 = vrot.slane %v2859_v38, 6 }
 0xd17   :  { %1016 = vrot.lane.b32.xlu0 %v1014_v54, %s2555_s8 }
 0xd18   :  { %2218 = vrcp.f32 %v1004_v51  ;;  %v1674_v51 = vld [vmem:[%s3235_s9 + $0x8] sm:$0xff] }
 0xd22   :  { %v2219_v5 = vpop.eup %2218 }
 0xd89   :  { %v1017_v10 = vpop.permute.xlu0 %1016 }
 0xd8a   :  { %v1019_v1 = vadd.f32 %v1017_v10, %v1013_v55 }
 0xd8c   :  { %2220 = vtanh.f32 %v1019_v1  ;;  %v1121_v45 = vrot.slane %v1019_v1, 6  ;;  %v1676_v1 = vld [vmem:[%s3235_s9 + $0x18] sm:$0xff] }
 0xd8d   :  { %2222 = vtanh.f32 %v1580_v18 }
 0xd96   :  { %v2221_v13 = vpop.eup %2220 }
 0xd97   :  { %v2962_v14 = vmul.f32 %v2221_v13, %v2219_v5  ;;  %v2970_v21 = vpop.eup %2222 }
 0xd98   :  { %1762 = vst.msk [vmem:[#allocation22] sm:$0x3] %vm1761_vm3, %v2970_v21 }
 0xd99   :  { %v1023_v15 = vrot.slane %v2962_v14, 4  ;;  %v1162_v62 = vrot.slane %v2962_v14, 2 }
 0xd9b   :  { %1024 = vrot.lane.b32.xlu1 %v1023_v15, %s2555_s8 }
 0xe0d   :  { %v1025_v20 = vpop.permute.xlu1 %1024 }
 0xe0e   :  { %1898 = vmatmul.mubr.msk.f32.vlgmr.msra.gmra.mrb[10].mxu0 %vm271_vm1, %v1025_v20 }
 0xe0f   :  { %2099 = vmatpush3.bf16.msra.mxu0 %v2098_v32  ;;  %1941 = vmatprep.mubr.msk.f32.mxu0 %vm2557_vm2, %v2554_v0 }
 0xe10   :  { %2100 = vmatprep.subr.bf16.mxu0 %v2556_v42 }
 0xe13   :  { %2102 = vmatpush3.bf16.msra.mxu0 %v2101_v37 }
 0xe16   :  { %1942 = vmatmul.mubr.msk.f32.vlgmr.msra.gmra.mrb[12].mxu0 %vm171_vm0, %v2970_v21 }
 0xee1   :  { %v1094_v23 = vpop.f32.mrb[10].mxu0 }
 0xee2   :  { %v1101_v24 = vrot.slane %v1094_v23, 2  ;;  %v1096_v25 = vpop.f32.mrb[11].mxu0  ;;  %v1905_v23 = vld [vmem:[%s3236_s10] ss:$0 sm:$0xff]  ;;  %s2561_s10 = smov [#allocation20]  }
 0xee3   :  { %v1102_v29 = vrot.slane %v1096_v25, 2  ;;  %s1836_s16 = sshll.u32 %s2561_s10, 4  ;;  %s3105_s16 = int_to_ptr.vmem [resolvable:$true] %s1836_s16 }
 0xee4   :  { %v1105_v26 = vadd.f32 %v1101_v24, %v2911_v46  ;;  %s2416_s28 = scalar_lea.vmem %s3105_s16, 64  ;;  %p2421_p9 = scmp.lt.s32.totalorder %s3105_s16, %s3105_s16 }
 0xee5   :  { %v1106_v30 = vadd.f32 %v1102_v29, %v2916_v53  ;;  %p2417_p8 = scmp.ne.s32.totalorder %s3105_s16, %s2416_s28  ;;  %p2422_p10 = scmp.lt.s32.totalorder %s2416_s28, %s2416_s28 }
 0xee6   :  { %v1899_v27 = vmul.f32 -1.442695, %v1105_v26 }
 0xee7   :  { %v1900_v43 = vmul.f32 -1.442695, %v1106_v30  ;;  %p2423_p11 = por %p2422_p10, %p2421_p9 }
 0xee8   :  { %2224 = vpow2.f32 %v1899_v27 }
 0xee9   :  { %2226 = vtanh.f32 %v1106_v30  ;;  %v1664_v36 = vpop.f32.mrb[12].mxu0  ;;  %p2424_p12 = pnand %p2423_p11, %p2417_p8 }
 0xeea   :  { %v1943_v46 = vpop.f32.mrb[13].mxu0  ;;  %v1665_v57 = vadd.f32 %v1903_v56, %v1664_v36  ;;  %v1178_v36 = vrot.slane %v2920_v2, 2 }
 0xef2   :  { %v2225_v4 = vpop.eup %2224 }
 0xef3   :  { %v1113_v0 = vadd.f32 1.0, %v2225_v4  ;;  %v2227_v31 = vpop.eup %2226 }
 0xef5   :  { %2228 = vrcp.f32 %v1113_v0 }
 0xef6   :  { %2230 = vpow2.f32 %v1900_v43  ;;  %v1189_v43 = vrot.slane %v2876_v12, 2 }
 0xeff   :  { %v2229_v34 = vpop.eup %2228 }
 0xf00   :  { %v1124_v35 = vmul.f32 %v2229_v34, %v2227_v31  ;;  %v1123_v52 = vmul.f32 %v2229_v34, %v1121_v45  ;;  %v2231_v53 = vpop.eup %2230 }
 0xf01   :  { %v1114_v47 = vadd.f32 1.0, %v2231_v53 }
 0xf02   :  { %1126 = vrot.lane.b32.xlu0 %v1124_v35, %s2555_s8 }
 0xf03   :  { %2232 = vrcp.f32 %v1114_v47 }
 0xf0d   :  { %v2233_v50 = vpop.eup %2232 }
 0xf74   :  { %v1127_v48 = vpop.permute.xlu0 %1126 }
 0xf75   :  { %v2979_v49 = vadd.f32 %v1127_v48, %v1123_v52 }
 0xf77   :  { %2234 = vtanh.f32 %v2979_v49 }
 0xf78   :  { %2236 = vtanh.f32 %v1665_v57 }
 0xf81   :  { %v2235_v54 = vpop.eup %2234 }
 0xf82   :  { %v2982_v55 = vmul.f32 %v2235_v54, %v2233_v50  ;;  %v2237_v58 = vpop.eup %2236 }
 0xf83   :  { %v1763_v7 = vsub.f32 %v2237_v58, %v2955_v61  ;;  %v1202_v61 = vrot.slane %v2835_v6, 2  ;;  %v1675_v6 = vld [vmem:[%s3235_s9 + $0x10] sm:$0xff] }
 0xf84   :  { %1669 = vrot.lane.b32.xlu1 %v2982_v55, %s2558_s1  ;;  %v2107_v5 = vpack.c.bf16 %v1676_v1, %v1675_v6  ;;  %v1154_v46 = vrot.slane %v2982_v55, 6 }
 0xf85   :  { %v1764_v59 = vmul.f32 %v1763_v7, %v1763_v7 }
 0xf87   :  { %v1765_v60 = vsel %vm1761_vm3, %v1764_v59, 0.0 }
 0xfa8   :  { %1766 = vadd.xlane.f32.xlu1 %v1765_v60 }
 0xfb9   :  { %1163 = vrot.lane.b32.xlu1 %v1162_v62, %s2555_s8 }
 0xfbd   :  { %1175 = vrot.lane.b32.xlu1 %v2893_v41, %s2555_s8  ;;  %v1673_v41 = vld [vmem:[%s3235_s9] sm:$0xff] }
 0xfbe   :  { %v2104_v10 = vpack.c.bf16 %v1674_v51, %v1673_v41 }
 0xfc0   :  { %2105 = vmatpush3.bf16.msra.mxu1 %v2104_v10 }
 0xfc1   :  { %1167 = vrot.lane.b32.xlu1 %v2876_v12, %s2555_s8  ;;  %2106 = vmatprep.subr.bf16.mxu1 %v2556_v42 }
 0xfc4   :  { %2108 = vmatpush3.bf16.msra.mxu1 %v2107_v5 }
 0xfc5   :  { %1133 = vrot.lane.b32.xlu1 %v2982_v55, %s2555_s8 }
 0xfc9   :  { %1186 = vrot.lane.b32.xlu1 %v2939_v28, %s2555_s8 }
 0xfcd   :  { %1203 = vrot.lane.b32.xlu1 %v1202_v61, %s2555_s8 }
 0xfd1   :  { %1198 = vrot.lane.b32.xlu1 %v1197_v63, %s2555_s8 }
 0xfd5   :  { %1148 = vrot.lane.b32.xlu1 %v2979_v49, %s2559_s2 }
 0xff6   :  { %v1670_v13 = vpop.permute.xlu1 %1669 }
 0xff7   :  { %v1672_v15 = vadd.f32 %v1670_v13, %v2982_v55 }
 0xff9   :  { %v1685_v8 = vrot.slane %v1672_v15, 6 }
 0xffb   :  { %1686 = vrot.lane.b32.xlu0 %v1685_v8, %s2555_s8 }
0x1035   :  { %v1767_v16 = vpop.xlane.xlu1 %1766 }
0x1036   :  { %v1768_v0 = vrot.slane %v1767_v16, 4 }
0x1038   :  { %v1769_v31 = vadd.f32 %v1768_v0, %v1767_v16 }
0x1039   :  { %v1164_v9 = vpop.permute.xlu1 %1163 }
0x103a   :  { %v1770_v45 = vrot.slane %v1769_v31, 2 }
0x103c   :  { %v1771_v34 = vadd.f32 %v1770_v45, %v1769_v31 }
0x103d   :  { %v1176_v18 = vpop.permute.xlu1 %1175 }
0x103e   :  { %v1772_v35 = vrot.slane %v1771_v34, 1 }
0x1040   :  { %v1773_v52 = vadd.f32 %v1772_v35, %v1771_v34 }
0x1041   :  { %v3018_v17 = vpop.permute.xlu1 %1167 }
0x1042   :  { %2109 = vpush %v1773_v52 }
0x1045   :  { %v1134_v22 = vpop.permute.xlu1 %1133 }
0x1046   :  { %1137 = vst.msk [vmem:[#allocation19 - $0x6] sm:$0xc0] %vm1136_vm4, %v1134_v22 }
0x1049   :  { %v3021_v32 = vpop.permute.xlu1 %1186 }
0x104d   :  { %v1204_v19 = vpop.permute.xlu1 %1203 }
0x104e   :  { %v3024_v42 = vsel %vm171_vm0, %v1134_v22, %v1204_v19 }
0x1051   :  { %v3026_v33 = vpop.permute.xlu1 %1198 }
0x1055   :  { %v1149_v20 = vpop.permute.xlu1 %1148 }
0x1056   :  { %1152 = vst.msk [vmem:[#allocation20 - $0x4] sm:$0xc0] %vm1136_vm4, %v1149_v20 }
0x106d   :  { %v1687_v37 = vpop.permute.xlu0 %1686 }
0x106e   :  { %1953 = vmatmul.mubr.msk.f32.vlgmr.msra.gmra.mrb[10].mxu1 %vm171_vm0, %v1687_v37 }
0x1141   :  { %v1756_v24 = vpop.f32.mrb[10].mxu1 }
0x1142   :  { %v1757_v25 = vadd.f32 %v1905_v23, %v1756_v24  ;;  %v1954_v26 = vpop.f32.mrb[11].mxu1 }
0x1144   :  { %2238 = vtanh.f32 %v1757_v25 }
0x114e   :  { %v2239_v27 = vpop.eup %2238 }
0x114f   :  { %v1778_v29 = vsub.f32 %v2239_v27, %v2970_v21  ;;  %v1170_v21 = vrot.slane %v2939_v28, 6 }
0x1151   :  { %v1779_v30 = vmul.f32 %v1778_v29, %v1778_v29 }
0x1153   :  { %v1780_v4 = vsel %vm1761_vm3, %v1779_v30, 0.0 }
0x1154   :  { %1781 = vadd.xlane.f32.xlu0 %v1780_v4 }
0x116a   :  { %1159 = vrot.lane.b32.xlu0 %v2859_v38, %s2555_s8  ;;  %v2560_v38 = vmov 1966171168  }
0x116b   :  { %v1209_v2 = vunpack.c.l.s4 %v2560_v38 }
0x116d   :  { %v1210_v53 = vunpack.c.0.s8 %v1209_v2 }
0x116e   :  { %1179 = vrot.lane.b32.xlu0 %v1178_v36, %s2555_s8 }
0x116f   :  { %v3052_v12 = vsub.s32 %v1210_v53, %v2813_v39 }
0x1172   :  { %1171 = vrot.lane.b32.xlu0 %v1170_v21, %s2555_s8 }
0x1176   :  { %1155 = vrot.lane.b32.xlu0 %v1154_v46, %s2555_s8 }
0x117a   :  { %1190 = vrot.lane.b32.xlu0 %v1189_v43, %s2555_s8 }
0x117e   :  { %1194 = vrot.lane.b32.xlu0 %v2962_v14, %s2555_s8 }
0x1182   :  { %1144 = vrot.lane.b32.xlu0 %v2979_v49, %s2555_s8 }
0x1186   :  { %1138 = vrot.lane.b32.xlu0 %v2982_v55, %s2559_s2  ;;  %v1185_v55 = vsel %vm171_vm0, %v2924_v3, %v2897_v44  ;;  %v1380_v44 = vcombine.high %v3024_v42, %v3024_v42 }
0x1187   :  { %v1314_v39 = vrot.slane %v1185_v55, %v3052_v12 }
0x1188   :  { %v1387_v16 = vrot.slane %v1380_v44, %v3052_v12 }
0x1189   :  { %v1315_v10 = vcombine.high %v1314_v39, %v1314_v39 }
0x118a   :  { %v1388_v29 = vcombine.high %v1387_v16, %v1387_v16  ;;  %v3091_v35 = vrot.slane %v1387_v16, %v3052_v12 }
0x118b   :  { %v3077_v20 = vrot.slane %v1315_v10, %v3052_v12 }
0x11e1   :  { %v1782_v28 = vpop.xlane.xlu0 %1781 }
0x11e2   :  { %v1783_v47 = vrot.slane %v1782_v28, 4 }
0x11e4   :  { %v1784_v48 = vadd.f32 %v1783_v47, %v1782_v28 }
0x11e5   :  { %v1160_v50 = vpop.permute.xlu0 %1159 }
0x11e6   :  { %v1785_v54 = vrot.slane %v1784_v48, 2  ;;  %v1166_v56 = vsel %vm171_vm0, %v1160_v50, %v1164_v9  ;;  %v3102_v50 = vrot.slane %v1388_v29, %v3052_v12 }
0x11e7   :  { %v1239_v14 = vrot.slane %v1166_v56, %v3052_v12 }
0x11e8   :  { %v1786_v57 = vadd.f32 %v1785_v54, %v1784_v48 }
0x11e9   :  { %v1180_v49 = vpop.permute.xlu0 %1179  ;;  %v1240_v60 = vcombine.high %v1239_v14, %v1239_v14  ;;  %v1247_v61 = vrot.slane %v1239_v14, %v3052_v12 }
0x11ea   :  { %v1182_v58 = vsel %vm171_vm0, %v1176_v18, %v1180_v49  ;;  %v1787_v7 = vrot.slane %v1786_v57, 1 }
0x11eb   :  { %v1282_v59 = vcombine.high %v1182_v58, %v1182_v58  ;;  %v1254_v6 = vrot.slane %v1240_v60, %v3052_v12  ;;  %v1255_v1 = vcombine.high %v1247_v61, %v1247_v61 }
0x11ec   :  { %v1788_v62 = vadd.f32 %v1787_v7, %v1786_v57 }
0x11ed   :  { %v1172_v63 = vpop.permute.xlu0 %1171  ;;  %v1289_v41 = vrot.slane %v1282_v59, %v3052_v12  ;;  %v1256_v22 = vcombine.high %v1254_v6, %v1254_v6  ;;  %v1408_v37 = vrot.slane %v1255_v1, %v2816_v40  ;;  %v1442_v59 = vrot.slane %v3077_v20, %v2816_v40 }
0x11ee   :  { %v1174_v51 = vsel %vm171_vm0, %v3018_v17, %v1172_v63  ;;  %2111 = vpush %v1788_v62  ;;  %v1322_v17 = vrot.slane %v1314_v39, %v3052_v12 }
0x11ef   :  { %v1258_v3 = vcombine.high %v1174_v51, %v1174_v51  ;;  %v1290_v15 = vcombine.high %v1289_v41, %v1289_v41  ;;  %v1297_v19 = vrot.slane %v1289_v41, %v3052_v12  ;;  %v1412_v0 = vrot.slane %v1256_v22, %v2816_v40 }
0x11f0   :  { %v1438_v48 = vrot.slane %v1322_v17, %v2816_v40 }
0x11f1   :  { %v1265_v5 = vrot.slane %v1258_v3, %v3052_v12  ;;  %v1156_v13 = vpop.permute.xlu0 %1155  ;;  %v1304_v24 = vrot.slane %v1290_v15, %v3052_v12  ;;  %v1305_v31 = vcombine.high %v1297_v19, %v1297_v19 }
0x11f2   :  { %v1158_v8 = vsel %vm171_vm0, %v2843_v11, %v1156_v13 }
0x11f3   :  { %v1266_v9 = vcombine.high %v1265_v5, %v1265_v5  ;;  %v1273_v18 = vrot.slane %v1265_v5, %v3052_v12  ;;  %v1214_v42 = vrot.slane %v1158_v8, %v3052_v12  ;;  %v1306_v46 = vcombine.high %v1304_v24, %v1304_v24 }
0x11f4   :  { %v1428_v54 = vrot.slane %v1305_v31, %v2816_v40 }
0x11f5   :  { %v1280_v23 = vrot.slane %v1266_v9, %v3052_v12  ;;  %v1191_v11 = vpop.permute.xlu0 %1190  ;;  %v1215_v25 = vcombine.high %v1214_v42, %v1214_v42  ;;  %v1222_v26 = vrot.slane %v1214_v42, %v3052_v12  ;;  %v1418_v30 = vrot.slane %v1273_v18, %v2816_v40 }
0x11f6   :  { %v1193_v27 = vsel %vm171_vm0, %v3021_v32, %v1191_v11  ;;  %v1432_v55 = vrot.slane %v1306_v46, %v2816_v40 }
0x11f7   :  { %v1337_v4 = vrot.slane %v1193_v27, %v3052_v12  ;;  %v1229_v45 = vrot.slane %v1215_v25, %v3052_v12  ;;  %v1476_v34 = vsel %vm1475_vm5, %v1222_v26, %v1408_v37  ;;  %v1422_v52 = vrot.slane %v1280_v23, %v2816_v40 }
0x11f8   :  { %v1479_v2 = vsel %vm1478_vm6, %v1476_v34, %v1418_v30 }
0x11f9   :  { %v1338_v36 = vcombine.high %v1337_v4, %v1337_v4  ;;  %v1345_v32 = vrot.slane %v1337_v4, %v3052_v12  ;;  %v1195_v21 = vpop.permute.xlu0 %1194  ;;  %v1477_v43 = vsel %vm1475_vm5, %v1229_v45, %v1412_v0  ;;  %v1482_v58 = vsel %vm1481_vm7, %v1479_v2, %v1428_v54 }
0x11fa   :  { %v1201_v38 = vsel %vm171_vm0, %v1195_v21, %v3026_v33  ;;  %v1403_v33 = vcombine.high %v3091_v35, %v3091_v35  ;;  %v1480_v56 = vsel %vm1478_vm6, %v1477_v43, %v1422_v52 }
0x11fb   :  { %v1352_v28 = vrot.slane %v1338_v36, %v3052_v12  ;;  %v1353_v53 = vcombine.high %v1345_v32, %v1345_v32  ;;  %v1356_v47 = vcombine.high %v1201_v38, %v1201_v38 }
0x11fd   :  { %v1354_v14 = vcombine.high %v1352_v28, %v1352_v28  ;;  %v1363_v57 = vrot.slane %v1356_v47, %v3052_v12  ;;  %v1145_v49 = vpop.permute.xlu0 %1144  ;;  %v1448_v7 = vrot.slane %v1353_v53, %v2816_v40 }
0x11fe   :  { %1147 = vst.msk [vmem:[#allocation20 - $0x6] sm:$0xc0] %vm1136_vm4, %v1145_v49 }
0x11ff   :  { %v1364_v60 = vcombine.high %v1363_v57, %v1363_v57  ;;  %v1371_v62 = vrot.slane %v1363_v57, %v3052_v12 }
0x1200   :  { %2427 = shalt.err (!%p2424_p12)
}
0x1201   :  { %s2428_s22 = scalar_lea.hbm %s3240_s14, 64 }
0x1202   :  { %p2429_p13 = scmp.ne.s32.totalorder %s3240_s14, %s2428_s22  ;;  %p2432_p0 = scmp.lt.u32.totalorder %s2428_s22, %s3240_s14 }
0x1204   :  { %p2434_p1 = pnand %p2432_p0, %p2429_p13 }
0x1206   :  { %2437 = shalt.err (!%p2434_p1)
}
0x1207   :  { %s2563_s0 = smov 2   ;;  %v1404_v39 = vcombine.high %v3102_v50, %v3102_v50  ;;  %v1452_v61 = vrot.slane %v1354_v14, %v2816_v40  ;;  %v1483_v63 = vsel %vm1481_vm7, %v1480_v56, %v1432_v55  ;;  %vm1490_vm10 = vcmask 1045504   ;;  %s2438_s24 = scalar_lea.vmem %s3111_s3, 32 }
0x1208   :  { %1842 = dma.vmem_to_hbm [thread:$0]  %s3105_s16, 64, %s3240_s14, [#allocation21], %s2559_s2, %s2559_s2, %s2563_s0  }
0x1209   :  { %p2439_p2 = scmp.ne.s32.totalorder %s3111_s3, %s2438_s24  ;;  %p2443_p3 = scmp.lt.s32.totalorder %s3111_s3, %s3111_s3 }
0x120a   :  { %p2444_p4 = scmp.lt.s32.totalorder %s2438_s24, %s2438_s24 }
0x120c   :  { %p2445_p5 = por %p2444_p4, %p2443_p3 }
0x120e   :  { %p2446_p6 = pnand %p2445_p5, %p2439_p2 }
0x1210   :  { %2449 = shalt.err (!%p2446_p6)
}
0x1211   :  { %s2450_s14 = scalar_lea.hbm %s3241_s15, 32 }
0x1212   :  { %p2451_p7 = scmp.ne.s32.totalorder %s3241_s15, %s2450_s14  ;;  %p2454_p8 = scmp.lt.u32.totalorder %s2450_s14, %s3241_s15 }
0x1214   :  { %p2456_p9 = pnand %p2454_p8, %p2451_p7 }
0x1216   :  { %2459 = shalt.err (!%p2456_p9)
}
0x1217   :  { %1852 = dma.vmem_to_hbm [thread:$0]  %s3111_s3, 32, %s3241_s15, [#allocation21]   ;;  %v1378_v41 = vrot.slane %v1364_v60, %v3052_v12  ;;  %v1458_v51 = vrot.slane %v1371_v62, %v2816_v40  ;;  %v1139_v44 = vpop.permute.xlu0 %1138  ;;  %v1485_v3 = vsel %vm1484_vm8, %v1482_v58, %v1438_v48  ;;  %vm1493_vm11 = vcmask 1046528  }
0x1218   :  { %v1468_v6 = vrot.slane %v1403_v33, %v2816_v40  ;;  %1142 = vst.msk [vmem:[#allocation19 - $0x4] sm:$0xc0] %vm1136_vm4, %v1139_v44  ;;  %v1488_v10 = vsel %vm1487_vm9, %v1485_v3, %v1448_v7  ;;  %s2564_s10 = smov [#allocation17]   ;;  %v1486_v5 = vsel %vm1484_vm8, %v1483_v63, %v1442_v59  ;;  %s2565_s15 = smov [#allocation19]   ;;  %v1472_v13 = vrot.slane %v1404_v39, %v2816_v40 }
0x1219   :  { %s1812_s16 = sshll.u32 %s2564_s10, 4  ;;  %v1462_v1 = vrot.slane %v1378_v41, %v2816_v40  ;;  %v1491_v12 = vsel %vm1490_vm10, %v1488_v10, %v1458_v51  ;;  %s1824_s17 = sshll.u32 %s2565_s15, 4  ;;  %v1489_v15 = vsel %vm1487_vm9, %v1486_v5, %v1452_v61  ;;  %s1813_s16 = int_to_ptr.vmem [resolvable:$true] %s1812_s16  ;;  %s3176_s17 = int_to_ptr.vmem [resolvable:$true] %s1824_s17 }
0x121a   :  { %v1494_v8 = vsel %vm1493_vm11, %v1491_v12, %v1468_v6  ;;  %s2460_s3 = scalar_lea.vmem %s1813_s16, 256  ;;  %p2465_p11 = scmp.lt.s32.totalorder %s1813_s16, %s1813_s16 }
0x121b   :  { %v1492_v16 = vsel %vm1490_vm10, %v1489_v15, %v1462_v1  ;;  %1496 = vst.msk [vmem:[#allocation17] sm:$0xff] %vm271_vm1, %v1494_v8  ;;  %p2461_p10 = scmp.ne.s32.totalorder %s1813_s16, %s2460_s3  ;;  %p2466_p12 = scmp.lt.s32.totalorder %s2460_s3, %s2460_s3 }
0x121c   :  { %v1495_v9 = vsel %vm1493_vm11, %v1492_v16, %v1472_v13 }
0x121d   :  { %1497 = vst.msk [vmem:[#allocation17 + $0x8] sm:$0xff] %vm271_vm1, %v1495_v9  ;;  %p2467_p13 = por %p2466_p12, %p2465_p11 }
0x121f   :  { %p2468_p0 = pnand %p2467_p13, %p2461_p10 }
0x1221   :  { %2471 = shalt.err (!%p2468_p0)
}
0x1222   :  { %s2472_s20 = scalar_lea.hbm %s3238_s12, 256 }
0x1223   :  { %p2473_p1 = scmp.ne.s32.totalorder %s3238_s12, %s2472_s20  ;;  %p2476_p2 = scmp.lt.u32.totalorder %s2472_s20, %s3238_s12 }
0x1225   :  { %p2478_p3 = pnand %p2476_p2, %p2473_p1 }
0x1227   :  { %2481 = shalt.err (!%p2478_p3)
}
0x1228   :  { %1818 = dma.vmem_to_hbm [thread:$0]  %s1813_s16, 256, %s3238_s12, [#allocation18], %s2548_s6, %s2548_s6, %s2549_s21  }
0x1229   :  { %s2482_s23 = scalar_lea.vmem %s3176_s17, 64  ;;  %p2487_p5 = scmp.lt.s32.totalorder %s3176_s17, %s3176_s17 }
0x122a   :  { %p2483_p4 = scmp.ne.s32.totalorder %s3176_s17, %s2482_s23  ;;  %p2488_p6 = scmp.lt.s32.totalorder %s2482_s23, %s2482_s23 }
0x122c   :  { %p2489_p7 = por %p2488_p6, %p2487_p5 }
0x122e   :  { %p2490_p8 = pnand %p2489_p7, %p2483_p4 }
0x1230   :  { %2493 = shalt.err (!%p2490_p8)
}
0x1231   :  { %s2494_s26 = scalar_lea.hbm %s3239_s13, 64 }
0x1232   :  { %p2495_p9 = scmp.ne.s32.totalorder %s3239_s13, %s2494_s26  ;;  %p2498_p10 = scmp.lt.u32.totalorder %s2494_s26, %s3239_s13 }
0x1234   :  { %p2500_p11 = pnand %p2498_p10, %p2495_p9 }
0x1236   :  { %2503 = shalt.err (!%p2500_p11)
}
0x1237   :  { %1830 = dma.vmem_to_hbm [thread:$0]  %s3176_s17, 64, %s3239_s13, [#allocation18], %s2559_s2, %s2559_s2, %s2563_s0   ;;  %vm1795_vm12 = vcmask 0  }
0x1238   :  { %s2110_s21 = spop %2109  ;;  %s2566_s10 = smov [#allocation16]  }
0x1239   :  { %s1777_s19 = smul.f32 0.015625, %s2110_s21  ;;  %s2112_s9 = spop %2111 }
0x123a   :  { %s1792_s30 = smul.f32 0.015625, %s2112_s9  ;;  %s1803_s16 = sshll.u32 %s2566_s10, 4  ;;  %s1804_s16 = int_to_ptr.vmem [resolvable:$true] %s1803_s16 }
0x123b   :  { %s2504_s3 = scalar_lea.vmem %s1804_s16, 16  ;;  %s2508_s28 = scalar_lea.vmem %s1804_s16, 32 }
0x123c   :  { %s1793_s15 = sadd.f32 %s1792_s30, %s1777_s19  ;;  %p2505_p12 = scmp.ne.s32.totalorder %s1804_s16, %s2504_s3 }
0x123d   :  { %p2509_p13 = scmp.lt.s32.totalorder %s1804_s16, %s1804_s16  ;;  %p2510_p0 = scmp.lt.s32.totalorder %s2508_s28, %s2504_s3 }
0x123e   :  { %v1794_v40 = vstv %s1793_s15 }
0x123f   :  { %1796 = vst.msk [vmem:[#allocation16] sm:$0x1] %vm1795_vm12, %v1794_v40  ;;  %p2511_p1 = por %p2510_p0, %p2509_p13 }
0x1241   :  { %p2512_p2 = pnand %p2511_p1, %p2505_p12 }
0x1243   :  { %2515 = shalt.err (!%p2512_p2)
}
0x1244   :  { %s3244_s0 = sld [smem:[#allocation31_spill]] }
0x124a   :  { %s2516_s17 = scalar_lea.hbm %s3244_s0, 16 }
0x124b   :  { %p2517_p3 = scmp.ne.s32.totalorder %s3244_s0, %s2516_s17  ;;  %p2520_p4 = scmp.lt.u32.totalorder %s2516_s17, %s3244_s0 }
0x124d   :  { %p2522_p5 = pnand %p2520_p4, %p2517_p3 }
0x124f   :  { %2525 = shalt.err (!%p2522_p5)
}
0x1250   :  { %1806 = dma.vmem_to_hbm [thread:$0]  %s1804_s16, 16, %s3244_s0, [#allocation4]  }
0x1251   :  { %2536 = dma.done.wait [#allocation4], 16  }
0x1252   :  { %2537 = vsyncadd [#allocation4], 4294967280 }
0x1253   :  { %2538 = dma.done.wait [#allocation18], 320  }
0x1254   :  { %2539 = vsyncadd [#allocation18], 4294966976 }
0x1255   :  { %2540 = dma.done.wait [#allocation21], 96  }
0x1256   :  { %2541 = vsyncadd [#allocation21], 4294967200 }
0x1257   :  { %1868 = vsyncpa [#allocation3], 1 }
0x1258   :  { %1869 = vsyncpa [#allocation6], 1 }
0x1259   :  { %1870 = vsyncpa [#allocation9], 1 }
0x125a   :  { %1871 = vsyncpa [#allocation12], 1 }
0x125b   :  { %1872 = vsyncpa [#allocation15], 1 }
0x125c   :  { %1873 = vsyncpa [#allocation4], 1 }
0x125d   :  { %1874 = vsyncpa [#allocation18], 1 }
0x125e   :  { %1875 = vsyncpa [#allocation21], 1 }

</bundles_post_ra>
